<compile_context>
chip_gen: v7x
topology: tpu7x:2x2x1
jax: 0.10.0
libtpu: 0.0.40
codegen_flags: <defaults>
</compile_context>

<pallas_src>
import numpy as np
import jax
import jax.numpy as jnp
from jax.experimental import pallas as pl
from jax.experimental.pallas import tpu as pltpu

LOG_SIG_MAX = 2.0
LOG_SIG_MIN = -20.0


def _leaky(x):
    # F.leaky_relu default slope 0.01; max(x, 0.01*x) is exact for slope < 1
    return jnp.maximum(x, 0.01 * x)


# --------------------------------------------------------------------------
# Precomputed pooling / im2col matrices (host-side numpy, baked as params)
# --------------------------------------------------------------------------
def _make_pool_matrix(OH, OW):
    """AvgPool2d(3,3) as a (PH*PW, OH*OW) matrix with 1/9 entries."""
    PH, PW = (OH - 3) // 3 + 1, (OW - 3) // 3 + 1
    P = np.zeros((PH * PW, OH * OW), np.float32)
    for p in range(PH):
        for q in range(PW):
            for di in range(3):
                for dj in range(3):
                    P[p * PW + q, (3 * p + di) * OW + (3 * q + dj)] = 1.0 / 9.0
    return P


def _make_pool1_im2col(OH1, OW1):
    """(9*OH2*OW2, OH1*OW1): row t*OH2*OW2 + r averages exactly the pool1 window
    that conv2 tap t (= kh*3+kw) needs at its output position r.  This fuses
    avgpool1 with conv2's im2col row gather into one matmul."""
    P1 = _make_pool_matrix(OH1, OW1)                       # (PH1*PW1, OH1*OW1)
    PH1, PW1 = (OH1 - 3) // 3 + 1, (OW1 - 3) // 3 + 1
    OH2, OW2 = PH1 - 2, PW1 - 2
    T = np.zeros((9 * OH2 * OW2, PH1 * PW1), np.float32)
    for kh in range(3):
        for kw in range(3):
            t = kh * 3 + kw
            for i in range(OH2):
                for j in range(OW2):
                    T[t * OH2 * OW2 + i * OW2 + j, (i + kh) * PW1 + (j + kw)] = 1.0
    return T @ P1                                          # (9*OH2*OW2, OH1*OW1)


# --------------------------------------------------------------------------
# Input prep (plain JAX; cheap, fused by XLA)
# --------------------------------------------------------------------------
def _preprocess(state):
    B = state.shape[0]
    # PyTorch: plane_state[:, 0:3] = state[:, 0, 0]   ((B, Cin); broadcasts for Cin==1)
    #          plane_state[:, 3]   = state[:, 0, 1, 0]
    ps = jnp.concatenate([jnp.broadcast_to(state[:, 0, 0], (B, 3)),
                          state[:, 0, 1, 0][:, None]], axis=1).astype(jnp.float32)
    return ps, state[:, 1:]                                # plane_state, map (NHWC)


def _im2col_3x3(x):
    """(B, H, W, C) -> (B, (H-2)*(W-2), 9*C); column order (kh, kw, c) matches a
    (3,3,C,Cout) HWIO weight reshaped to (9*C, Cout)."""
    B, H, W, C = x.shape
    OH, OW = H - 2, W - 2
    cols = [x[:, kh:kh + OH, kw:kw + OW, :].reshape(B, OH * OW, C)
            for kh in range(3) for kw in range(3)]
    return jnp.concatenate(cols, axis=2)


# --------------------------------------------------------------------------
# The fused kernel (one batch element per grid step)
# --------------------------------------------------------------------------
def _make_fused_kernel(Hm, Wm):
    OH1, OW1 = Hm - 2, Wm - 2
    PH1, PW1 = (OH1 - 3) // 3 + 1, (OW1 - 3) // 3 + 1
    OH2, OW2 = PH1 - 2, PW1 - 2
    PH2, PW2 = (OH2 - 3) // 3 + 1, (OW2 - 3) // 3 + 1
    S2 = PH2 * PW2          # spatial size after pool2
    R2 = OH2 * OW2          # spatial size after conv2

    def kernel(patches1_ref, ps_ref,
               w1_ref, w2_ref, bconv_ref, p1im_ref, pool2_ref,
               wfc1_ref, bfc1_ref, wfc2_ref, wfc3_ref,
               whh_ref, bh_ref, wfc7_ref, bfc7_ref, whead_ref, bhead_ref,
               out_ref):
        def mm(a, b):
            return jnp.dot(a, b, preferred_element_type=jnp.float32)

        # conv1 (single im2col matmul, K = 9*Cin) + bias + leaky_relu
        a1 = _leaky(mm(patches1_ref[0], w1_ref[...]) + bconv_ref[0])      # (OH1*OW1, 64)
        # avgpool1 fused with conv2's im2col row gather: one matmul
        g = mm(p1im_ref[...], a1)                                         # (9*R2, 64)
        # conv2: 9 taps, each a dense K=64 matmul, f32-accumulated
        acc = jnp.zeros((R2, 64), jnp.float32) + bconv_ref[1]
        for t in range(9):                                                # static unroll
            acc = acc + mm(g[t * R2:(t + 1) * R2, :], w2_ref[t])
        a2 = _leaky(acc)                                                  # (R2, 64)
        # avgpool2; NHWC flatten (fc1_w rows pre-permuted to this order).
        # Dropout(p=0.2) is identity in eval mode.  (reshape is a no-op when S2==1)
        x1 = mm(pool2_ref[...], a2).reshape(1, S2 * 64)                   # (1, conv_to_fc)

        x1 = _leaky(mm(x1, wfc1_ref[...]) + bfc1_ref[...])                # fc1
        x1 = _leaky(mm(x1, wfc2_ref[...]) + bh_ref[0])                    # fc2
        x2 = _leaky(mm(ps_ref[0], wfc3_ref[...]) + bh_ref[1])             # fc3
        x2 = _leaky(mm(x2, whh_ref[0]) + bh_ref[2])                       # fc4
        x2 = _leaky(mm(x2, whh_ref[1]) + bh_ref[3])                       # fc5
        # fc6(cat([x1, x2], 1)) == x1 @ W6[:h] + x2 @ W6[h:]
        x3 = _leaky(mm(x1, whh_ref[2]) + mm(x2, whh_ref[3]) + bh_ref[4])  # fc6
        x3 = _leaky(mm(x3, wfc7_ref[...]) + bfc7_ref[...])                # fc7
        out = mm(x3, whead_ref[...]) + bhead_ref[...]                     # (1, 2) = [mean | log_std]
        is_logstd = jax.lax.broadcasted_iota(jnp.int32, out.shape, 1) == 1
        out_ref[0] = jnp.where(is_logstd,
                               jnp.clip(out, LOG_SIG_MIN, LOG_SIG_MAX), out)

    return kernel


# --------------------------------------------------------------------------
# Forward wrapper
# --------------------------------------------------------------------------
def gaussian_policy_forward(state, params):
    B, Hm1, Wm, Cin = state.shape
    Hm = Hm1 - 1
    ps, map_state = _preprocess(state)
    patches1 = _im2col_3x3(map_state)                     # (B, OH1*OW1, 9*Cin)
    ps3 = ps.reshape(B, 1, ps.shape[1])                   # (B, 1, 4)

    weights = (params["conv1_w"], params["conv2_w"], params["conv_b"],
               params["pool1_im2col"], params["pool2"],
               params["fc1_w"], params["fc1_b"], params["fc2_w"], params["fc3_w"],
               params["whh"], params["bh"], params["fc7_w"], params["fc7_b"],
               params["head_w"], params["head_b"])

    def full_spec(a):
        zero = (0,) * a.ndim
        return pl.BlockSpec(a.shape, lambda b, _z=zero: _z)

    N1, K1 = patches1.shape[1], patches1.shape[2]
    out = pl.pallas_call(
        _make_fused_kernel(Hm, Wm),
        out_shape=jax.ShapeDtypeStruct((B, 1, 2), jnp.float32),
        grid=(B,),
        in_specs=[pl.BlockSpec((1, N1, K1), lambda b: (b, 0, 0)),
                  pl.BlockSpec((1, 1, ps.shape[1]), lambda b: (b, 0, 0))]
                 + [full_spec(w) for w in weights],
        out_specs=pl.BlockSpec((1, 1, 2), lambda b: (b, 0, 0)),
        compiler_params=pltpu.CompilerParams(dimension_semantics=("parallel",)),
    )(patches1, ps3, *weights)

    out = out.reshape(B, 2)
    return out[:, 0:1], out[:, 1:2]                       # mean, log_std


# --------------------------------------------------------------------------
# Pure-JAX reference (lax.conv) used for in-script correctness check
# --------------------------------------------------------------------------
def reference_forward(state, params):
    B, Hm1, Wm, Cin = state.shape
    ps, x = _preprocess(state)
    w1 = params["conv1_w"].reshape(3, 3, Cin, 64)
    w2 = params["conv2_w"].reshape(3, 3, 64, 64)

    def conv(z, w, b):
        y = jax.lax.conv_general_dilated(z, w, (1, 1), "VALID",
                                         dimension_numbers=("NHWC", "HWIO", "NHWC"))
        return _leaky(y + b)

    def pool(z):
        B_, H_, W_, C_ = z.shape
        PH_, PW_ = H_ // 3, W_ // 3
        z = z[:, :PH_ * 3, :PW_ * 3, :]
        return z.reshape(B_, PH_, 3, PW_, 3, C_).mean(axis=(2, 4))

    hmap = pool(conv(x, w1, params["conv_b"][0]))
    hmap = pool(conv(hmap, w2, params["conv_b"][1]))
    x1 = hmap.reshape(B, -1)                              # NHWC flatten (fc1_w matches)
    x1 = _leaky(x1 @ params["fc1_w"] + params["fc1_b"])
    x1 = _leaky(x1 @ params["fc2_w"] + params["bh"][0])
    x2 = _leaky(ps @ params["fc3_w"] + params["bh"][1])
    x2 = _leaky(x2 @ params["whh"][0] + params["bh"][2])
    x2 = _leaky(x2 @ params["whh"][1] + params["bh"][3])
    x3 = _leaky(x1 @ params["whh"][2] + x2 @ params["whh"][3] + params["bh"][4])
    x3 = _leaky(x3 @ params["fc7_w"] + params["fc7_b"])
    out = x3 @ params["head_w"] + params["head_b"]
    return out[:, 0:1], jnp.clip(out[:, 1:2], LOG_SIG_MIN, LOG_SIG_MAX)


# --------------------------------------------------------------------------
# Parameter construction (shapes match the module __init__)
# --------------------------------------------------------------------------
def init_params(key, num_inputs, hidden_dim, map_input):
    Cin, Hm, Wm = map_input
    OH1, OW1 = Hm - 2, Wm - 2
    PH1, PW1 = (OH1 - 3) // 3 + 1, (OW1 - 3) // 3 + 1
    OH2, OW2 = PH1 - 2, PW1 - 2
    PH2, PW2 = (OH2 - 3) // 3 + 1, (OW2 - 3) // 3 + 1
    S2 = PH2 * PW2
    conv_to_fc = 64 * S2
    h, h2 = hidden_dim, hidden_dim // 2
    ks = jax.random.split(key, 14)

    def conv_uniform(k, shape, fan_in):        # PyTorch Conv2d default bound 1/sqrt(fan_in)
        lim = float(1.0 / np.sqrt(fan_in))
        return jax.random.uniform(k, shape, jnp.float32, -lim, lim)

    def xavier(k, fan_in, fan_out):            # weights_init_: xavier_uniform, zero bias
        lim = float(np.sqrt(6.0 / (fan_in + fan_out)))
        return jax.random.uniform(k, (fan_in, fan_out), jnp.float32, -lim, lim)

    # conv weights in im2col layout: row = (kh*3 + kw)*Cin + cin
    conv1_w = conv_uniform(ks[0], (3, 3, Cin, 64), Cin * 9).reshape(9 * Cin, 64)
    conv2_w = conv_uniform(ks[1], (3, 3, 64, 64), 64 * 9).reshape(9, 64, 64)
    conv_b = jnp.stack([conv_uniform(ks[2], (64,), Cin * 9),
                        conv_uniform(ks[3], (64,), 64 * 9)])          # (2, 64)

    # fc1: generated in PyTorch NCHW-flatten row order, then rows permuted so the
    # kernel can flatten NHWC (spatial-major, channel-minor) with no transpose.
    fc1_t = xavier(ks[4], conv_to_fc, 2 * h)
    fc1_w = fc1_t.reshape(64, S2, 2 * h).transpose(1, 0, 2).reshape(conv_to_fc, 2 * h)

    fc6_w = xavier(ks[8], 2 * h, h)
    whh = jnp.stack([xavier(ks[6], h, h),      # fc4
                     xavier(ks[7], h, h),      # fc5
                     fc6_w[:h],                # fc6 (x1 half)
                     fc6_w[h:]])               # fc6 (x2 half)
    head_w = jnp.concatenate([xavier(ks[10], h2, 1),                  # mean_fc
                              xavier(ks[11], h2, 1)], axis=1)         # log_std_fc

    return {
        "conv1_w": conv1_w, "conv2_w": conv2_w, "conv_b": conv_b,
        "pool1_im2col": jnp.asarray(_make_pool1_im2col(OH1, OW1)),
        "pool2": jnp.asarray(_make_pool_matrix(OH2, OW2)),
        "fc1_w": fc1_w, "fc1_b": jnp.zeros((1, 2 * h), jnp.float32),
        "fc2_w": xavier(ks[5], 2 * h, h),
        "fc3_w": xavier(ks[12], num_inputs, h),
        "whh": whh,
        "bh": jnp.zeros((5, h), jnp.float32),   # fc2..fc6 biases (zero per weights_init_)
        "fc7_w": xavier(ks[9], h, h2), "fc7_b": jnp.zeros((1, h2), jnp.float32),
        "head_w": head_w, "head_b": jnp.zeros((1, 2), jnp.float32),
    }


if __name__ == "__main__":
    B = 2
    hidden_dim = 32
    num_inputs = 4
    map_input = (1, 17, 17)   # (Cin, Hm, Wm): 17 -> conv 15 -> pool 5 -> conv 3 -> pool 1

    key = jax.random.PRNGKey(0)
    k_param, k_state = jax.random.split(key)
    params = init_params(k_param, num_inputs, hidden_dim, map_input)

    # state layout expected by the module: (B, Hm+1, Wm, Cin); row 0 carries the
    # plane scalars, rows 1: are the occupancy map.
    state = jax.random.normal(
        k_state, (B, map_input[1] + 1, map_input[2], map_input[0]), jnp.float32)

    fwd = jax.jit(gaussian_policy_forward)
    mean, log_std = fwd(state, params)
    jax.block_until_ready((mean, log_std))

    mean_ref, log_std_ref = reference_forward(state, params)
    assert mean.shape == (B, 1) and log_std.shape == (B, 1)
    np.testing.assert_allclose(np.asarray(mean), np.asarray(mean_ref), rtol=1e-3, atol=1e-4)
    np.testing.assert_allclose(np.asarray(log_std), np.asarray(log_std_ref), rtol=1e-3, atol=1e-4)
    assert bool(jnp.all(log_std >= LOG_SIG_MIN)) and bool(jnp.all(log_std <= LOG_SIG_MAX))
    # TODO(synk): .sample() (Normal rsample / tanh squash / log_prob) not implemented; only forward().
    print("KERNEL_OK")
</pallas_src>

<mosaic_0001>
module attributes {stable_mosaic.version = 11 : i64} {
  func.func @kernel(%arg0: i32, %arg1: memref<1x225x9xf32, #tpu.memory_space<vmem>>, %arg2: memref<1x1x4xf32, #tpu.memory_space<vmem>>, %arg3: memref<9x64xf32, #tpu.memory_space<vmem>>, %arg4: memref<9x64x64xf32, #tpu.memory_space<vmem>>, %arg5: memref<2x64xf32, #tpu.memory_space<vmem>>, %arg6: memref<81x225xf32, #tpu.memory_space<vmem>>, %arg7: memref<1x9xf32, #tpu.memory_space<vmem>>, %arg8: memref<64x64xf32, #tpu.memory_space<vmem>>, %arg9: memref<1x64xf32, #tpu.memory_space<vmem>>, %arg10: memref<64x32xf32, #tpu.memory_space<vmem>>, %arg11: memref<4x32xf32, #tpu.memory_space<vmem>>, %arg12: memref<4x32x32xf32, #tpu.memory_space<vmem>>, %arg13: memref<5x32xf32, #tpu.memory_space<vmem>>, %arg14: memref<32x16xf32, #tpu.memory_space<vmem>>, %arg15: memref<1x16xf32, #tpu.memory_space<vmem>>, %arg16: memref<16x2xf32, #tpu.memory_space<vmem>>, %arg17: memref<1x2xf32, #tpu.memory_space<vmem>>, %arg18: memref<1x1x2xf32, #tpu.memory_space<vmem>>) attributes {dimension_semantics = [#tpu.dimension_semantics<parallel>], iteration_bounds = array<i64: 2>, scalar_prefetch = 0 : i64, scratch_operands = 0 : i64, tpu.core_type = #tpu.core_type<tc>, window_params = [{transform_indices = @transform_0, window_bounds = array<i64: 1, 225, 9>}, {transform_indices = @transform_1, window_bounds = array<i64: 1, 1, 4>}, {pipeline_mode = #tpu.pipeline_mode<synchronous>, transform_indices = @transform_2, window_bounds = array<i64: 9, 64>}, {pipeline_mode = #tpu.pipeline_mode<synchronous>, transform_indices = @transform_3, window_bounds = array<i64: 9, 64, 64>}, {pipeline_mode = #tpu.pipeline_mode<synchronous>, transform_indices = @transform_4, window_bounds = array<i64: 2, 64>}, {pipeline_mode = #tpu.pipeline_mode<synchronous>, transform_indices = @transform_5, window_bounds = array<i64: 81, 225>}, {pipeline_mode = #tpu.pipeline_mode<synchronous>, transform_indices = @transform_6, window_bounds = array<i64: 1, 9>}, {pipeline_mode = #tpu.pipeline_mode<synchronous>, transform_indices = @transform_7, window_bounds = array<i64: 64, 64>}, {pipeline_mode = #tpu.pipeline_mode<synchronous>, transform_indices = @transform_8, window_bounds = array<i64: 1, 64>}, {pipeline_mode = #tpu.pipeline_mode<synchronous>, transform_indices = @transform_9, window_bounds = array<i64: 64, 32>}, {pipeline_mode = #tpu.pipeline_mode<synchronous>, transform_indices = @transform_10, window_bounds = array<i64: 4, 32>}, {pipeline_mode = #tpu.pipeline_mode<synchronous>, transform_indices = @transform_11, window_bounds = array<i64: 4, 32, 32>}, {pipeline_mode = #tpu.pipeline_mode<synchronous>, transform_indices = @transform_12, window_bounds = array<i64: 5, 32>}, {pipeline_mode = #tpu.pipeline_mode<synchronous>, transform_indices = @transform_13, window_bounds = array<i64: 32, 16>}, {pipeline_mode = #tpu.pipeline_mode<synchronous>, transform_indices = @transform_14, window_bounds = array<i64: 1, 16>}, {pipeline_mode = #tpu.pipeline_mode<synchronous>, transform_indices = @transform_15, window_bounds = array<i64: 16, 2>}, {pipeline_mode = #tpu.pipeline_mode<synchronous>, transform_indices = @transform_16, window_bounds = array<i64: 1, 2>}, {transform_indices = @transform_17, window_bounds = array<i64: 1, 1, 2>}]} {
    %c0 = arith.constant 0 : index
    %c0_0 = arith.constant 0 : index
    %c0_1 = arith.constant 0 : index
    %0 = vector.load %arg1[%c0, %c0_0, %c0_1] : memref<1x225x9xf32, #tpu.memory_space<vmem>>, vector<1x225x9xf32>
    %1 = vector.shape_cast %0 : vector<1x225x9xf32> to vector<225x9xf32>
    %c0_2 = arith.constant 0 : index
    %c0_3 = arith.constant 0 : index
    %2 = vector.load %arg3[%c0_2, %c0_3] : memref<9x64xf32, #tpu.memory_space<vmem>>, vector<9x64xf32>
    %cst = arith.constant dense<0.000000e+00> : vector<225x64xf32>
    %3 = tpu.matmul %1, %2, %cst {dimension_numbers = #tpu.dot_dimension_numbers<[1], [0], [0], [1], [0, 0, 1, 1], [], []>} : vector<225x9xf32>, vector<9x64xf32>, vector<225x64xf32> -> vector<225x64xf32>
    %c0_4 = arith.constant 0 : index
    %c0_5 = arith.constant 0 : index
    %4 = vector.load %arg5[%c0_4, %c0_5] : memref<2x64xf32, #tpu.memory_space<vmem>>, vector<1x64xf32>
    %5 = vector.shape_cast %4 : vector<1x64xf32> to vector<64xf32>
    %6 = vector.shape_cast %5 : vector<64xf32> to vector<1x64xf32>
    %7 = vector.broadcast %6 : vector<1x64xf32> to vector<225x64xf32>
    %8 = arith.addf %3, %7 : vector<225x64xf32>
    %cst_6 = arith.constant 0.00999999977 : f32
    %9 = vector.broadcast %cst_6 : f32 to vector<225x64xf32>
    %10 = arith.mulf %9, %8 : vector<225x64xf32>
    %11 = arith.maximumf %8, %10 : vector<225x64xf32>
    %c0_7 = arith.constant 0 : index
    %c0_8 = arith.constant 0 : index
    %12 = vector.load %arg6[%c0_7, %c0_8] : memref<81x225xf32, #tpu.memory_space<vmem>>, vector<81x225xf32>
    %cst_9 = arith.constant dense<0.000000e+00> : vector<81x64xf32>
    %13 = tpu.matmul %12, %11, %cst_9 {dimension_numbers = #tpu.dot_dimension_numbers<[1], [0], [0], [1], [0, 0, 1, 1], [], []>} : vector<81x225xf32>, vector<225x64xf32>, vector<81x64xf32> -> vector<81x64xf32>
    %cst_10 = arith.constant 0.000000e+00 : f32
    %14 = vector.broadcast %cst_10 : f32 to vector<9x64xf32>
    %c1 = arith.constant 1 : index
    %c0_11 = arith.constant 0 : index
    %15 = vector.load %arg5[%c1, %c0_11] : memref<2x64xf32, #tpu.memory_space<vmem>>, vector<1x64xf32>
    %16 = vector.shape_cast %15 : vector<1x64xf32> to vector<64xf32>
    %17 = vector.shape_cast %16 : vector<64xf32> to vector<1x64xf32>
    %18 = vector.broadcast %17 : vector<1x64xf32> to vector<9x64xf32>
    %19 = arith.addf %14, %18 : vector<9x64xf32>
    %20 = vector.extract_strided_slice %13 {offsets = [0, 0], sizes = [9, 64], strides = [1, 1]} : vector<81x64xf32> to vector<9x64xf32>
    %c0_12 = arith.constant 0 : index
    %c0_13 = arith.constant 0 : index
    %c0_14 = arith.constant 0 : index
    %21 = vector.load %arg4[%c0_12, %c0_13, %c0_14] : memref<9x64x64xf32, #tpu.memory_space<vmem>>, vector<1x64x64xf32>
    %22 = vector.shape_cast %21 : vector<1x64x64xf32> to vector<64x64xf32>
    %cst_15 = arith.constant dense<0.000000e+00> : vector<9x64xf32>
    %23 = tpu.matmul %20, %22, %cst_15 {dimension_numbers = #tpu.dot_dimension_numbers<[1], [0], [0], [1], [0, 0, 1, 1], [], []>} : vector<9x64xf32>, vector<64x64xf32>, vector<9x64xf32> -> vector<9x64xf32>
    %24 = arith.addf %19, %23 : vector<9x64xf32>
    %25 = vector.extract_strided_slice %13 {offsets = [9, 0], sizes = [9, 64], strides = [1, 1]} : vector<81x64xf32> to vector<9x64xf32>
    %c1_16 = arith.constant 1 : index
    %c0_17 = arith.constant 0 : index
    %c0_18 = arith.constant 0 : index
    %26 = vector.load %arg4[%c1_16, %c0_17, %c0_18] : memref<9x64x64xf32, #tpu.memory_space<vmem>>, vector<1x64x64xf32>
    %27 = vector.shape_cast %26 : vector<1x64x64xf32> to vector<64x64xf32>
    %cst_19 = arith.constant dense<0.000000e+00> : vector<9x64xf32>
    %28 = tpu.matmul %25, %27, %cst_19 {dimension_numbers = #tpu.dot_dimension_numbers<[1], [0], [0], [1], [0, 0, 1, 1], [], []>} : vector<9x64xf32>, vector<64x64xf32>, vector<9x64xf32> -> vector<9x64xf32>
    %29 = arith.addf %24, %28 : vector<9x64xf32>
    %30 = vector.extract_strided_slice %13 {offsets = [18, 0], sizes = [9, 64], strides = [1, 1]} : vector<81x64xf32> to vector<9x64xf32>
    %c2 = arith.constant 2 : index
    %c0_20 = arith.constant 0 : index
    %c0_21 = arith.constant 0 : index
    %31 = vector.load %arg4[%c2, %c0_20, %c0_21] : memref<9x64x64xf32, #tpu.memory_space<vmem>>, vector<1x64x64xf32>
    %32 = vector.shape_cast %31 : vector<1x64x64xf32> to vector<64x64xf32>
    %cst_22 = arith.constant dense<0.000000e+00> : vector<9x64xf32>
    %33 = tpu.matmul %30, %32, %cst_22 {dimension_numbers = #tpu.dot_dimension_numbers<[1], [0], [0], [1], [0, 0, 1, 1], [], []>} : vector<9x64xf32>, vector<64x64xf32>, vector<9x64xf32> -> vector<9x64xf32>
    %34 = arith.addf %29, %33 : vector<9x64xf32>
    %35 = vector.extract_strided_slice %13 {offsets = [27, 0], sizes = [9, 64], strides = [1, 1]} : vector<81x64xf32> to vector<9x64xf32>
    %c3 = arith.constant 3 : index
    %c0_23 = arith.constant 0 : index
    %c0_24 = arith.constant 0 : index
    %36 = vector.load %arg4[%c3, %c0_23, %c0_24] : memref<9x64x64xf32, #tpu.memory_space<vmem>>, vector<1x64x64xf32>
    %37 = vector.shape_cast %36 : vector<1x64x64xf32> to vector<64x64xf32>
    %cst_25 = arith.constant dense<0.000000e+00> : vector<9x64xf32>
    %38 = tpu.matmul %35, %37, %cst_25 {dimension_numbers = #tpu.dot_dimension_numbers<[1], [0], [0], [1], [0, 0, 1, 1], [], []>} : vector<9x64xf32>, vector<64x64xf32>, vector<9x64xf32> -> vector<9x64xf32>
    %39 = arith.addf %34, %38 : vector<9x64xf32>
    %40 = vector.extract_strided_slice %13 {offsets = [36, 0], sizes = [9, 64], strides = [1, 1]} : vector<81x64xf32> to vector<9x64xf32>
    %c4 = arith.constant 4 : index
    %c0_26 = arith.constant 0 : index
    %c0_27 = arith.constant 0 : index
    %41 = vector.load %arg4[%c4, %c0_26, %c0_27] : memref<9x64x64xf32, #tpu.memory_space<vmem>>, vector<1x64x64xf32>
    %42 = vector.shape_cast %41 : vector<1x64x64xf32> to vector<64x64xf32>
    %cst_28 = arith.constant dense<0.000000e+00> : vector<9x64xf32>
    %43 = tpu.matmul %40, %42, %cst_28 {dimension_numbers = #tpu.dot_dimension_numbers<[1], [0], [0], [1], [0, 0, 1, 1], [], []>} : vector<9x64xf32>, vector<64x64xf32>, vector<9x64xf32> -> vector<9x64xf32>
    %44 = arith.addf %39, %43 : vector<9x64xf32>
    %45 = vector.extract_strided_slice %13 {offsets = [45, 0], sizes = [9, 64], strides = [1, 1]} : vector<81x64xf32> to vector<9x64xf32>
    %c5 = arith.constant 5 : index
    %c0_29 = arith.constant 0 : index
    %c0_30 = arith.constant 0 : index
    %46 = vector.load %arg4[%c5, %c0_29, %c0_30] : memref<9x64x64xf32, #tpu.memory_space<vmem>>, vector<1x64x64xf32>
    %47 = vector.shape_cast %46 : vector<1x64x64xf32> to vector<64x64xf32>
    %cst_31 = arith.constant dense<0.000000e+00> : vector<9x64xf32>
    %48 = tpu.matmul %45, %47, %cst_31 {dimension_numbers = #tpu.dot_dimension_numbers<[1], [0], [0], [1], [0, 0, 1, 1], [], []>} : vector<9x64xf32>, vector<64x64xf32>, vector<9x64xf32> -> vector<9x64xf32>
    %49 = arith.addf %44, %48 : vector<9x64xf32>
    %50 = vector.extract_strided_slice %13 {offsets = [54, 0], sizes = [9, 64], strides = [1, 1]} : vector<81x64xf32> to vector<9x64xf32>
    %c6 = arith.constant 6 : index
    %c0_32 = arith.constant 0 : index
    %c0_33 = arith.constant 0 : index
    %51 = vector.load %arg4[%c6, %c0_32, %c0_33] : memref<9x64x64xf32, #tpu.memory_space<vmem>>, vector<1x64x64xf32>
    %52 = vector.shape_cast %51 : vector<1x64x64xf32> to vector<64x64xf32>
    %cst_34 = arith.constant dense<0.000000e+00> : vector<9x64xf32>
    %53 = tpu.matmul %50, %52, %cst_34 {dimension_numbers = #tpu.dot_dimension_numbers<[1], [0], [0], [1], [0, 0, 1, 1], [], []>} : vector<9x64xf32>, vector<64x64xf32>, vector<9x64xf32> -> vector<9x64xf32>
    %54 = arith.addf %49, %53 : vector<9x64xf32>
    %55 = vector.extract_strided_slice %13 {offsets = [63, 0], sizes = [9, 64], strides = [1, 1]} : vector<81x64xf32> to vector<9x64xf32>
    %c7 = arith.constant 7 : index
    %c0_35 = arith.constant 0 : index
    %c0_36 = arith.constant 0 : index
    %56 = vector.load %arg4[%c7, %c0_35, %c0_36] : memref<9x64x64xf32, #tpu.memory_space<vmem>>, vector<1x64x64xf32>
    %57 = vector.shape_cast %56 : vector<1x64x64xf32> to vector<64x64xf32>
    %cst_37 = arith.constant dense<0.000000e+00> : vector<9x64xf32>
    %58 = tpu.matmul %55, %57, %cst_37 {dimension_numbers = #tpu.dot_dimension_numbers<[1], [0], [0], [1], [0, 0, 1, 1], [], []>} : vector<9x64xf32>, vector<64x64xf32>, vector<9x64xf32> -> vector<9x64xf32>
    %59 = arith.addf %54, %58 : vector<9x64xf32>
    %60 = vector.extract_strided_slice %13 {offsets = [72, 0], sizes = [9, 64], strides = [1, 1]} : vector<81x64xf32> to vector<9x64xf32>
    %c8 = arith.constant 8 : index
    %c0_38 = arith.constant 0 : index
    %c0_39 = arith.constant 0 : index
    %61 = vector.load %arg4[%c8, %c0_38, %c0_39] : memref<9x64x64xf32, #tpu.memory_space<vmem>>, vector<1x64x64xf32>
    %62 = vector.shape_cast %61 : vector<1x64x64xf32> to vector<64x64xf32>
    %cst_40 = arith.constant dense<0.000000e+00> : vector<9x64xf32>
    %63 = tpu.matmul %60, %62, %cst_40 {dimension_numbers = #tpu.dot_dimension_numbers<[1], [0], [0], [1], [0, 0, 1, 1], [], []>} : vector<9x64xf32>, vector<64x64xf32>, vector<9x64xf32> -> vector<9x64xf32>
    %64 = arith.addf %59, %63 : vector<9x64xf32>
    %cst_41 = arith.constant 0.00999999977 : f32
    %65 = vector.broadcast %cst_41 : f32 to vector<9x64xf32>
    %66 = arith.mulf %65, %64 : vector<9x64xf32>
    %67 = arith.maximumf %64, %66 : vector<9x64xf32>
    %c0_42 = arith.constant 0 : index
    %c0_43 = arith.constant 0 : index
    %68 = vector.load %arg7[%c0_42, %c0_43] : memref<1x9xf32, #tpu.memory_space<vmem>>, vector<1x9xf32>
    %cst_44 = arith.constant dense<0.000000e+00> : vector<1x64xf32>
    %69 = tpu.matmul %68, %67, %cst_44 {dimension_numbers = #tpu.dot_dimension_numbers<[1], [0], [0], [1], [0, 0, 1, 1], [], []>} : vector<1x9xf32>, vector<9x64xf32>, vector<1x64xf32> -> vector<1x64xf32>
    %c0_45 = arith.constant 0 : index
    %c0_46 = arith.constant 0 : index
    %70 = vector.load %arg8[%c0_45, %c0_46] : memref<64x64xf32, #tpu.memory_space<vmem>>, vector<64x64xf32>
    %cst_47 = arith.constant dense<0.000000e+00> : vector<1x64xf32>
    %71 = tpu.matmul %69, %70, %cst_47 {dimension_numbers = #tpu.dot_dimension_numbers<[1], [0], [0], [1], [0, 0, 1, 1], [], []>} : vector<1x64xf32>, vector<64x64xf32>, vector<1x64xf32> -> vector<1x64xf32>
    %c0_48 = arith.constant 0 : index
    %c0_49 = arith.constant 0 : index
    %72 = vector.load %arg9[%c0_48, %c0_49] : memref<1x64xf32, #tpu.memory_space<vmem>>, vector<1x64xf32>
    %73 = arith.addf %71, %72 : vector<1x64xf32>
    %cst_50 = arith.constant 0.00999999977 : f32
    %74 = vector.broadcast %cst_50 : f32 to vector<1x64xf32>
    %75 = arith.mulf %74, %73 : vector<1x64xf32>
    %76 = arith.maximumf %73, %75 : vector<1x64xf32>
    %c0_51 = arith.constant 0 : index
    %c0_52 = arith.constant 0 : index
    %77 = vector.load %arg10[%c0_51, %c0_52] : memref<64x32xf32, #tpu.memory_space<vmem>>, vector<64x32xf32>
    %cst_53 = arith.constant dense<0.000000e+00> : vector<1x32xf32>
    %78 = tpu.matmul %76, %77, %cst_53 {dimension_numbers = #tpu.dot_dimension_numbers<[1], [0], [0], [1], [0, 0, 1, 1], [], []>} : vector<1x64xf32>, vector<64x32xf32>, vector<1x32xf32> -> vector<1x32xf32>
    %c0_54 = arith.constant 0 : index
    %c0_55 = arith.constant 0 : index
    %79 = vector.load %arg13[%c0_54, %c0_55] : memref<5x32xf32, #tpu.memory_space<vmem>>, vector<1x32xf32>
    %80 = vector.shape_cast %79 : vector<1x32xf32> to vector<32xf32>
    %81 = vector.shape_cast %80 : vector<32xf32> to vector<1x32xf32>
    %82 = arith.addf %78, %81 : vector<1x32xf32>
    %cst_56 = arith.constant 0.00999999977 : f32
    %83 = vector.broadcast %cst_56 : f32 to vector<1x32xf32>
    %84 = arith.mulf %83, %82 : vector<1x32xf32>
    %85 = arith.maximumf %82, %84 : vector<1x32xf32>
    %c0_57 = arith.constant 0 : index
    %c0_58 = arith.constant 0 : index
    %c0_59 = arith.constant 0 : index
    %86 = vector.load %arg2[%c0_57, %c0_58, %c0_59] : memref<1x1x4xf32, #tpu.memory_space<vmem>>, vector<1x1x4xf32>
    %87 = vector.shape_cast %86 : vector<1x1x4xf32> to vector<1x4xf32>
    %c0_60 = arith.constant 0 : index
    %c0_61 = arith.constant 0 : index
    %88 = vector.load %arg11[%c0_60, %c0_61] : memref<4x32xf32, #tpu.memory_space<vmem>>, vector<4x32xf32>
    %cst_62 = arith.constant dense<0.000000e+00> : vector<1x32xf32>
    %89 = tpu.matmul %87, %88, %cst_62 {dimension_numbers = #tpu.dot_dimension_numbers<[1], [0], [0], [1], [0, 0, 1, 1], [], []>} : vector<1x4xf32>, vector<4x32xf32>, vector<1x32xf32> -> vector<1x32xf32>
    %c1_63 = arith.constant 1 : index
    %c0_64 = arith.constant 0 : index
    %90 = vector.load %arg13[%c1_63, %c0_64] : memref<5x32xf32, #tpu.memory_space<vmem>>, vector<1x32xf32>
    %91 = vector.shape_cast %90 : vector<1x32xf32> to vector<32xf32>
    %92 = vector.shape_cast %91 : vector<32xf32> to vector<1x32xf32>
    %93 = arith.addf %89, %92 : vector<1x32xf32>
    %cst_65 = arith.constant 0.00999999977 : f32
    %94 = vector.broadcast %cst_65 : f32 to vector<1x32xf32>
    %95 = arith.mulf %94, %93 : vector<1x32xf32>
    %96 = arith.maximumf %93, %95 : vector<1x32xf32>
    %c0_66 = arith.constant 0 : index
    %c0_67 = arith.constant 0 : index
    %c0_68 = arith.constant 0 : index
    %97 = vector.load %arg12[%c0_66, %c0_67, %c0_68] : memref<4x32x32xf32, #tpu.memory_space<vmem>>, vector<1x32x32xf32>
    %98 = vector.shape_cast %97 : vector<1x32x32xf32> to vector<32x32xf32>
    %cst_69 = arith.constant dense<0.000000e+00> : vector<1x32xf32>
    %99 = tpu.matmul %96, %98, %cst_69 {dimension_numbers = #tpu.dot_dimension_numbers<[1], [0], [0], [1], [0, 0, 1, 1], [], []>} : vector<1x32xf32>, vector<32x32xf32>, vector<1x32xf32> -> vector<1x32xf32>
    %c2_70 = arith.constant 2 : index
    %c0_71 = arith.constant 0 : index
    %100 = vector.load %arg13[%c2_70, %c0_71] : memref<5x32xf32, #tpu.memory_space<vmem>>, vector<1x32xf32>
    %101 = vector.shape_cast %100 : vector<1x32xf32> to vector<32xf32>
    %102 = vector.shape_cast %101 : vector<32xf32> to vector<1x32xf32>
    %103 = arith.addf %99, %102 : vector<1x32xf32>
    %cst_72 = arith.constant 0.00999999977 : f32
    %104 = vector.broadcast %cst_72 : f32 to vector<1x32xf32>
    %105 = arith.mulf %104, %103 : vector<1x32xf32>
    %106 = arith.maximumf %103, %105 : vector<1x32xf32>
    %c1_73 = arith.constant 1 : index
    %c0_74 = arith.constant 0 : index
    %c0_75 = arith.constant 0 : index
    %107 = vector.load %arg12[%c1_73, %c0_74, %c0_75] : memref<4x32x32xf32, #tpu.memory_space<vmem>>, vector<1x32x32xf32>
    %108 = vector.shape_cast %107 : vector<1x32x32xf32> to vector<32x32xf32>
    %cst_76 = arith.constant dense<0.000000e+00> : vector<1x32xf32>
    %109 = tpu.matmul %106, %108, %cst_76 {dimension_numbers = #tpu.dot_dimension_numbers<[1], [0], [0], [1], [0, 0, 1, 1], [], []>} : vector<1x32xf32>, vector<32x32xf32>, vector<1x32xf32> -> vector<1x32xf32>
    %c3_77 = arith.constant 3 : index
    %c0_78 = arith.constant 0 : index
    %110 = vector.load %arg13[%c3_77, %c0_78] : memref<5x32xf32, #tpu.memory_space<vmem>>, vector<1x32xf32>
    %111 = vector.shape_cast %110 : vector<1x32xf32> to vector<32xf32>
    %112 = vector.shape_cast %111 : vector<32xf32> to vector<1x32xf32>
    %113 = arith.addf %109, %112 : vector<1x32xf32>
    %cst_79 = arith.constant 0.00999999977 : f32
    %114 = vector.broadcast %cst_79 : f32 to vector<1x32xf32>
    %115 = arith.mulf %114, %113 : vector<1x32xf32>
    %116 = arith.maximumf %113, %115 : vector<1x32xf32>
    %c2_80 = arith.constant 2 : index
    %c0_81 = arith.constant 0 : index
    %c0_82 = arith.constant 0 : index
    %117 = vector.load %arg12[%c2_80, %c0_81, %c0_82] : memref<4x32x32xf32, #tpu.memory_space<vmem>>, vector<1x32x32xf32>
    %118 = vector.shape_cast %117 : vector<1x32x32xf32> to vector<32x32xf32>
    %cst_83 = arith.constant dense<0.000000e+00> : vector<1x32xf32>
    %119 = tpu.matmul %85, %118, %cst_83 {dimension_numbers = #tpu.dot_dimension_numbers<[1], [0], [0], [1], [0, 0, 1, 1], [], []>} : vector<1x32xf32>, vector<32x32xf32>, vector<1x32xf32> -> vector<1x32xf32>
    %c3_84 = arith.constant 3 : index
    %c0_85 = arith.constant 0 : index
    %c0_86 = arith.constant 0 : index
    %120 = vector.load %arg12[%c3_84, %c0_85, %c0_86] : memref<4x32x32xf32, #tpu.memory_space<vmem>>, vector<1x32x32xf32>
    %121 = vector.shape_cast %120 : vector<1x32x32xf32> to vector<32x32xf32>
    %cst_87 = arith.constant dense<0.000000e+00> : vector<1x32xf32>
    %122 = tpu.matmul %116, %121, %cst_87 {dimension_numbers = #tpu.dot_dimension_numbers<[1], [0], [0], [1], [0, 0, 1, 1], [], []>} : vector<1x32xf32>, vector<32x32xf32>, vector<1x32xf32> -> vector<1x32xf32>
    %123 = arith.addf %119, %122 : vector<1x32xf32>
    %c4_88 = arith.constant 4 : index
    %c0_89 = arith.constant 0 : index
    %124 = vector.load %arg13[%c4_88, %c0_89] : memref<5x32xf32, #tpu.memory_space<vmem>>, vector<1x32xf32>
    %125 = vector.shape_cast %124 : vector<1x32xf32> to vector<32xf32>
    %126 = vector.shape_cast %125 : vector<32xf32> to vector<1x32xf32>
    %127 = arith.addf %123, %126 : vector<1x32xf32>
    %cst_90 = arith.constant 0.00999999977 : f32
    %128 = vector.broadcast %cst_90 : f32 to vector<1x32xf32>
    %129 = arith.mulf %128, %127 : vector<1x32xf32>
    %130 = arith.maximumf %127, %129 : vector<1x32xf32>
    %c0_91 = arith.constant 0 : index
    %c0_92 = arith.constant 0 : index
    %131 = vector.load %arg14[%c0_91, %c0_92] : memref<32x16xf32, #tpu.memory_space<vmem>>, vector<32x16xf32>
    %cst_93 = arith.constant dense<0.000000e+00> : vector<1x16xf32>
    %132 = tpu.matmul %130, %131, %cst_93 {dimension_numbers = #tpu.dot_dimension_numbers<[1], [0], [0], [1], [0, 0, 1, 1], [], []>} : vector<1x32xf32>, vector<32x16xf32>, vector<1x16xf32> -> vector<1x16xf32>
    %c0_94 = arith.constant 0 : index
    %c0_95 = arith.constant 0 : index
    %133 = vector.load %arg15[%c0_94, %c0_95] : memref<1x16xf32, #tpu.memory_space<vmem>>, vector<1x16xf32>
    %134 = arith.addf %132, %133 : vector<1x16xf32>
    %cst_96 = arith.constant 0.00999999977 : f32
    %135 = vector.broadcast %cst_96 : f32 to vector<1x16xf32>
    %136 = arith.mulf %135, %134 : vector<1x16xf32>
    %137 = arith.maximumf %134, %136 : vector<1x16xf32>
    %c0_97 = arith.constant 0 : index
    %c0_98 = arith.constant 0 : index
    %138 = vector.load %arg16[%c0_97, %c0_98] : memref<16x2xf32, #tpu.memory_space<vmem>>, vector<16x2xf32>
    %cst_99 = arith.constant dense<0.000000e+00> : vector<1x2xf32>
    %139 = tpu.matmul %137, %138, %cst_99 {dimension_numbers = #tpu.dot_dimension_numbers<[1], [0], [0], [1], [0, 0, 1, 1], [], []>} : vector<1x16xf32>, vector<16x2xf32>, vector<1x2xf32> -> vector<1x2xf32>
    %c0_100 = arith.constant 0 : index
    %c0_101 = arith.constant 0 : index
    %140 = vector.load %arg17[%c0_100, %c0_101] : memref<1x2xf32, #tpu.memory_space<vmem>>, vector<1x2xf32>
    %141 = arith.addf %139, %140 : vector<1x2xf32>
    %142 = tpu.iota {dimensions = array<i32: 1>} : vector<1x2xi32>
    %c1_i32 = arith.constant 1 : i32
    %143 = vector.broadcast %c1_i32 : i32 to vector<1x2xi32>
    %144 = arith.cmpi eq, %142, %143 : vector<1x2xi32>
    %cst_102 = arith.constant -2.000000e+01 : f32
    %cst_103 = arith.constant 2.000000e+00 : f32
    %145 = vector.broadcast %cst_102 : f32 to vector<1x2xf32>
    %146 = arith.maximumf %145, %141 : vector<1x2xf32>
    %147 = vector.broadcast %cst_103 : f32 to vector<1x2xf32>
    %148 = arith.minimumf %147, %146 : vector<1x2xf32>
    %149 = arith.select %144, %148, %141 : vector<1x2xi1>, vector<1x2xf32>
    %c0_104 = arith.constant 0 : index
    %c0_105 = arith.constant 0 : index
    %c0_106 = arith.constant 0 : index
    %150 = vector.load %arg18[%c0_104, %c0_105, %c0_106] : memref<1x1x2xf32, #tpu.memory_space<vmem>>, vector<1x1x2xf32>
    %151 = vector.shape_cast %150 : vector<1x1x2xf32> to vector<1x2xf32>
    %152 = vector.shape_cast %149 : vector<1x2xf32> to vector<1x1x2xf32>
    tpu.vector_store %arg18[%c0_104, %c0_105, %c0_106], %152 {strides = array<i32>} : memref<1x1x2xf32, #tpu.memory_space<vmem>>, vector<1x1x2xf32>,
    return
  }
  func.func @transform_0(%arg0: i32) -> (i32, i32, i32) {
    %c0_i32 = arith.constant 0 : i32
    %c0_i32_0 = arith.constant 0 : i32
    %c0_i32_1 = arith.constant 0 : i32
    return %arg0, %c0_i32, %c0_i32_0 : i32, i32, i32
  }
  func.func @transform_1(%arg0: i32) -> (i32, i32, i32) {
    %c0_i32 = arith.constant 0 : i32
    %c0_i32_0 = arith.constant 0 : i32
    %c0_i32_1 = arith.constant 0 : i32
    return %arg0, %c0_i32, %c0_i32_0 : i32, i32, i32
  }
  func.func @transform_2(%arg0: i32) -> (i32, i32) {
    %c0_i32 = arith.constant 0 : i32
    %c0_i32_0 = arith.constant 0 : i32
    %c0_i32_1 = arith.constant 0 : i32
    return %c0_i32, %c0_i32_0 : i32, i32
  }
  func.func @transform_3(%arg0: i32) -> (i32, i32, i32) {
    %c0_i32 = arith.constant 0 : i32
    %c0_i32_0 = arith.constant 0 : i32
    %c0_i32_1 = arith.constant 0 : i32
    %c0_i32_2 = arith.constant 0 : i32
    return %c0_i32, %c0_i32_0, %c0_i32_1 : i32, i32, i32
  }
  func.func @transform_4(%arg0: i32) -> (i32, i32) {
    %c0_i32 = arith.constant 0 : i32
    %c0_i32_0 = arith.constant 0 : i32
    %c0_i32_1 = arith.constant 0 : i32
    return %c0_i32, %c0_i32_0 : i32, i32
  }
  func.func @transform_5(%arg0: i32) -> (i32, i32) {
    %c0_i32 = arith.constant 0 : i32
    %c0_i32_0 = arith.constant 0 : i32
    %c0_i32_1 = arith.constant 0 : i32
    return %c0_i32, %c0_i32_0 : i32, i32
  }
  func.func @transform_6(%arg0: i32) -> (i32, i32) {
    %c0_i32 = arith.constant 0 : i32
    %c0_i32_0 = arith.constant 0 : i32
    %c0_i32_1 = arith.constant 0 : i32
    return %c0_i32, %c0_i32_0 : i32, i32
  }
  func.func @transform_7(%arg0: i32) -> (i32, i32) {
    %c0_i32 = arith.constant 0 : i32
    %c0_i32_0 = arith.constant 0 : i32
    %c0_i32_1 = arith.constant 0 : i32
    return %c0_i32, %c0_i32_0 : i32, i32
  }
  func.func @transform_8(%arg0: i32) -> (i32, i32) {
    %c0_i32 = arith.constant 0 : i32
    %c0_i32_0 = arith.constant 0 : i32
    %c0_i32_1 = arith.constant 0 : i32
    return %c0_i32, %c0_i32_0 : i32, i32
  }
  func.func @transform_9(%arg0: i32) -> (i32, i32) {
    %c0_i32 = arith.constant 0 : i32
    %c0_i32_0 = arith.constant 0 : i32
    %c0_i32_1 = arith.constant 0 : i32
    return %c0_i32, %c0_i32_0 : i32, i32
  }
  func.func @transform_10(%arg0: i32) -> (i32, i32) {
    %c0_i32 = arith.constant 0 : i32
    %c0_i32_0 = arith.constant 0 : i32
    %c0_i32_1 = arith.constant 0 : i32
    return %c0_i32, %c0_i32_0 : i32, i32
  }
  func.func @transform_11(%arg0: i32) -> (i32, i32, i32) {
    %c0_i32 = arith.constant 0 : i32
    %c0_i32_0 = arith.constant 0 : i32
    %c0_i32_1 = arith.constant 0 : i32
    %c0_i32_2 = arith.constant 0 : i32
    return %c0_i32, %c0_i32_0, %c0_i32_1 : i32, i32, i32
  }
  func.func @transform_12(%arg0: i32) -> (i32, i32) {
    %c0_i32 = arith.constant 0 : i32
    %c0_i32_0 = arith.constant 0 : i32
    %c0_i32_1 = arith.constant 0 : i32
    return %c0_i32, %c0_i32_0 : i32, i32
  }
  func.func @transform_13(%arg0: i32) -> (i32, i32) {
    %c0_i32 = arith.constant 0 : i32
    %c0_i32_0 = arith.constant 0 : i32
    %c0_i32_1 = arith.constant 0 : i32
    return %c0_i32, %c0_i32_0 : i32, i32
  }
  func.func @transform_14(%arg0: i32) -> (i32, i32) {
    %c0_i32 = arith.constant 0 : i32
    %c0_i32_0 = arith.constant 0 : i32
    %c0_i32_1 = arith.constant 0 : i32
    return %c0_i32, %c0_i32_0 : i32, i32
  }
  func.func @transform_15(%arg0: i32) -> (i32, i32) {
    %c0_i32 = arith.constant 0 : i32
    %c0_i32_0 = arith.constant 0 : i32
    %c0_i32_1 = arith.constant 0 : i32
    return %c0_i32, %c0_i32_0 : i32, i32
  }
  func.func @transform_16(%arg0: i32) -> (i32, i32) {
    %c0_i32 = arith.constant 0 : i32
    %c0_i32_0 = arith.constant 0 : i32
    %c0_i32_1 = arith.constant 0 : i32
    return %c0_i32, %c0_i32_0 : i32, i32
  }
  func.func @transform_17(%arg0: i32) -> (i32, i32, i32) {
    %c0_i32 = arith.constant 0 : i32
    %c0_i32_0 = arith.constant 0 : i32
    %c0_i32_1 = arith.constant 0 : i32
    return %arg0, %c0_i32, %c0_i32_0 : i32, i32, i32
  }
}

</mosaic_0001>

<bundles_post_ra>
// kernel: gaussian_policy_forward.1
= control target key start
LH: loop header
LB: loop body
LE: loop exit
PB: predicated region body
PF: predicated region fallthrough
CT: control target
= control target key end

     0   :  { %s3950_s24 = smov 0   ;;  %s4723_s0 = inlined_call_operand.vmem [shape: f32[2,225,9], index: 0, kind: input, shape index: {}]   ;;  %s4724_s1 = inlined_call_operand.vmem [shape: f32[2,1,4], index: 1, kind: input, shape index: {}]   ;;  %s4725_s2 = inlined_call_operand.vmem [shape: f32[9,64], index: 2, kind: input, shape index: {}]   ;;  %s4726_s3 = inlined_call_operand.vmem [shape: f32[9,64,64], index: 3, kind: input, shape index: {}]   ;;  %s4727_s4 = inlined_call_operand.vmem [shape: f32[2,64], index: 4, kind: input, shape index: {}]   ;;  %s4728_s5 = inlined_call_operand.vmem [shape: f32[81,225], index: 5, kind: input, shape index: {}]   ;;  %s4729_s6 = inlined_call_operand.vmem [shape: f32[1,9], index: 6, kind: input, shape index: {}]   ;;  %s4730_s7 = inlined_call_operand.vmem [shape: f32[64,64], index: 7, kind: input, shape index: {}]   ;;  %s4731_s8 = inlined_call_operand.vmem [shape: f32[1,64], index: 8, kind: input, shape index: {}]   ;;  %s4732_s9 = inlined_call_operand.vmem [shape: f32[64,32], index: 9, kind: input, shape index: {}]   ;;  %s4733_s10 = inlined_call_operand.vmem [shape: f32[4,32], index: 10, kind: input, shape index: {}]   ;;  %s4734_s11 = inlined_call_operand.vmem [shape: f32[4,32,32], index: 11, kind: input, shape index: {}]   ;;  %s4735_s12 = inlined_call_operand.vmem [shape: f32[5,32], index: 12, kind: input, shape index: {}]   ;;  %s4736_s13 = inlined_call_operand.vmem [shape: f32[32,16], index: 13, kind: input, shape index: {}]   ;;  %s4737_s14 = inlined_call_operand.vmem [shape: f32[1,16], index: 14, kind: input, shape index: {}]   ;;  %s4738_s15 = inlined_call_operand.vmem [shape: f32[16,2], index: 15, kind: input, shape index: {}]   ;;  %s4739_s16 = inlined_call_operand.vmem [shape: f32[1,2], index: 16, kind: input, shape index: {}]   ;;  %s4740_s17 = inlined_call_operand.vmem [shape: f32[2,1,2], index: 17, kind: output, shape index: {}]  }
   0x1   :  { %4741 = sst [smem:[#allocation2_spill]] %s4723_s0 }
   0x2   :  { %4742 = sst [smem:[#allocation3_spill]] %s4724_s1 }
   0x3 LB: > { %s2862_s25 = sadd.s32 4294967295, %s3854_s24   ;;  %p2866_p0 = scmp.ge.s32.totalorder %s3854_s24, 1  ;;  %s3854_s24 = sphi %s3950_s24, %s27_s24  }
   0x4   : > { %p495_p1 = scmp.lt.s32.totalorder %s3854_s24, 3 }
   0x6   : > { %p496_p2 = pnand %p2866_p0, %p495_p1 }
   0x7   : > { %v588_v0 = vld [vmem:[%s4725_s2] sm:$0xff] (!%p496_p2)  ;;  %v589_v1 = vld [vmem:[%s4725_s2 + $0x8] sm:$0x1] (!%p496_p2)  ;;  %vm683_vm0 = vcmask (!%p496_p2), 1040384   ;;  %v3856_v2 = vmov (!%p496_p2), 0.0|0.0   ;;  %vm3857_vm1 = vmmov (!%p496_p2), 1  }
   0x8   : > { %499 = sbr.rel (%p496_p2) target bundleno = 2667 (0xa6b), region = 88  ;;  %3566 = vmatprep.subr.bf16.mxu0 (!%p496_p2), %v3856_v2  ;;  %v3567_v3 = vpack.c.bf16 (!%p496_p2), %v589_v1, %v588_v0  ;;  %vm3966_vm2 = vmpackc.low (!%p496_p2), %vm683_vm0, %vm3857_vm1  ;;  %p548_p3 = scmp.lt.s32.totalorder (!%p496_p2), %s2862_s25, 1  ;;  %3570 = vmatprep.subr.bf16.mxu1 (!%p496_p2), %v3856_v2  ;;  %vm3858_vm3 = vmmov (!%p496_p2), 0   ;;  %v3859_v5 = vmov (!%p496_p2), 0.0   ;;  %vm595_vm4 = vcmask (!%p496_p2), 72704   ;;  %v956_v35 = vld [vmem:[%s4728_s5 + $0x8] sm:$0xff] (!%p496_p2) }
   0x9   : > { %3196 = vmatprep.mubr.msk.f32.mxu0 (!%p496_p2), %vm3858_vm3, %v3859_v5  ;;  %s4745_s19 = sld [smem:[#allocation2_spill]] (!%p496_p2)  ;;  %vm977_vm5 = vcmask (!%p496_p2), 793600   ;;  %v4104_v36 = vld [vmem:[%s4727_s4] ss:$0 sm:$0xff] (!%p496_p2)  ;;  %vm1148_vm6 = vcmask (!%p496_p2), 523264   ;;  %vm1242_vm7 = vcmask (!%p496_p2), 1046528  }
   0xa   : > { %3569 = vmatpush3.bf16.msk.msra.mxu0 (!%p496_p2), %vm3966_vm2, %v3567_v3  ;;  %2900 = vmatprep.mubr.msk.f32.mxu1 (!%p496_p2), %vm977_vm5, %v956_v35  ;;  %vm1337_vm8 = vcmask (!%p496_p2), 1045504   ;;  %vm1432_vm9 = vcmask (!%p496_p2), 1044480   ;;  %vm1527_vm10 = vcmask (!%p496_p2), 1043456   ;;  %vm1622_vm11 = vcmask (!%p496_p2), 1042432  }
   0xb   : > { %vm1717_vm12 = vcmask (!%p496_p2), 1041408   ;;  %vm2240_vm13 = vcmask (!%p496_p2), 31744   ;;  %vm2324_vm14 = vcmask (!%p496_p2), 261120   ;;  %vm2724_vm15 = vcmask (!%p496_p2), 130048  }
   0xc   : > { %vm2804_vm1 = vcmask (!%p496_p2), 8192  }
   0xf   : > { %s4748_s25 = smov (!%p548_p3, %s2862_s25), 1 }
  0x10   : > { %s3835_s0 = smul.u32 232, %s4748_s25 }
  0x12   : > { %s3981_s1 = scalar_lea.vmem %s4745_s19, %s3835_s0  ;;  %s4746_s19 = sld [smem:[#allocation3_spill]] }
  0x13   : > { %v559_v6 = vld [vmem:[%s3981_s1] sm:$0xff]  ;;  %v560_v7 = vld [vmem:[%s3981_s1 + $0x8] sm:$0xff]  ;;  %v561_v8 = vld [vmem:[%s3981_s1 + $0x10] sm:$0xff]  ;;  %s558_s0 = scalar_lea.vmem %s4740_s17, %s4748_s25 }
  0x14   : > { %3197 = vmatmul.mubr.msk.f32.vlgmr.msra.gmra.mrb[0].mxu0 %vm595_vm4, %v559_v6  ;;  %v562_v9 = vld [vmem:[%s3981_s1 + $0x18] sm:$0xff]  ;;  %v563_v10 = vld [vmem:[%s3981_s1 + $0x20] sm:$0xff]  ;;  %v564_v11 = vld [vmem:[%s3981_s1 + $0x28] sm:$0xff] }
  0x15   : > { %3199 = vmatprep.mubr.msk.f32.mxu0 %vm3858_vm3, %v3859_v5  ;;  %v565_v12 = vld [vmem:[%s3981_s1 + $0x30] sm:$0xff]  ;;  %v566_v13 = vld [vmem:[%s3981_s1 + $0x38] sm:$0xff]  ;;  %v567_v14 = vld [vmem:[%s3981_s1 + $0x40] sm:$0xff] }
  0x16   : > { %v568_v15 = vld [vmem:[%s3981_s1 + $0x48] sm:$0xff]  ;;  %v569_v16 = vld [vmem:[%s3981_s1 + $0x50] sm:$0xff]  ;;  %v570_v17 = vld [vmem:[%s3981_s1 + $0x58] sm:$0xff] }
  0x17   : > { %v571_v18 = vld [vmem:[%s3981_s1 + $0x60] sm:$0xff]  ;;  %v572_v19 = vld [vmem:[%s3981_s1 + $0x68] sm:$0xff]  ;;  %v573_v20 = vld [vmem:[%s3981_s1 + $0x70] sm:$0xff] }
  0x18   : > { %3200 = vmatmul.mubr.msk.f32.gmra.mrb[2].mxu0 %vm595_vm4, %v560_v7  ;;  %v574_v21 = vld [vmem:[%s3981_s1 + $0x78] sm:$0xff]  ;;  %v575_v22 = vld [vmem:[%s3981_s1 + $0x80] sm:$0xff]  ;;  %v576_v23 = vld [vmem:[%s3981_s1 + $0x88] sm:$0xff] }
  0x19   : > { %3202 = vmatprep.mubr.msk.f32.mxu0 %vm3858_vm3, %v3859_v5  ;;  %v577_v24 = vld [vmem:[%s3981_s1 + $0x90] sm:$0xff]  ;;  %v578_v25 = vld [vmem:[%s3981_s1 + $0x98] sm:$0xff]  ;;  %v579_v26 = vld [vmem:[%s3981_s1 + $0xa0] sm:$0xff] }
  0x1a   : > { %v580_v27 = vld [vmem:[%s3981_s1 + $0xa8] sm:$0xff]  ;;  %v581_v28 = vld [vmem:[%s3981_s1 + $0xb0] sm:$0xff]  ;;  %v582_v29 = vld [vmem:[%s3981_s1 + $0xb8] sm:$0xff] }
  0x1b   : > { %v583_v30 = vld [vmem:[%s3981_s1 + $0xc0] sm:$0xff]  ;;  %v584_v31 = vld [vmem:[%s3981_s1 + $0xc8] sm:$0xff]  ;;  %v585_v32 = vld [vmem:[%s3981_s1 + $0xd0] sm:$0xff] }
  0x1c   : > { %3203 = vmatmul.mubr.msk.f32.gmra.mrb[4].mxu0 %vm595_vm4, %v561_v8  ;;  %v586_v33 = vld [vmem:[%s3981_s1 + $0xd8] sm:$0xff]  ;;  %v587_v34 = vld [vmem:[%s3981_s1 + $0xe0] sm:$0x1]  ;;  %s555_s1 = scalar_lea.vmem %s4746_s19, %s4748_s25 }
  0x1d   : > { %3205 = vmatprep.mubr.msk.f32.mxu0 %vm3858_vm3, %v3859_v5 }
  0x20   : > { %3206 = vmatmul.mubr.msk.f32.gmra.mrb[6].mxu0 %vm595_vm4, %v562_v9 }
  0x21   : > { %3208 = vmatprep.mubr.msk.f32.mxu0 %vm3858_vm3, %v3859_v5 }
  0x24   : > { %3209 = vmatmul.mubr.msk.f32.gmra.mrb[8].mxu0 %vm595_vm4, %v563_v10 }
  0x25   : > { %3211 = vmatprep.mubr.msk.f32.mxu0 %vm3858_vm3, %v3859_v5 }
  0x28   : > { %3212 = vmatmul.mubr.msk.f32.gmra.mrb[10].mxu0 %vm595_vm4, %v564_v11 }
  0x29   : > { %3214 = vmatprep.mubr.msk.f32.mxu0 %vm3858_vm3, %v3859_v5 }
  0x2c   : > { %3215 = vmatmul.mubr.msk.f32.gmra.mrb[12].mxu0 %vm595_vm4, %v565_v12 }
  0x2d   : > { %3217 = vmatprep.mubr.msk.f32.mxu0 %vm3858_vm3, %v3859_v5 }
  0x30   : > { %3218 = vmatmul.mubr.msk.f32.gmra.mrb[14].mxu0 %vm595_vm4, %v566_v13 }
  0x31   : > { %3220 = vmatprep.mubr.msk.f32.mxu0 %vm3858_vm3, %v3859_v5 }
  0x34   : > { %3221 = vmatmul.mubr.msk.f32.gmra.mrb[16].mxu0 %vm595_vm4, %v567_v14 }
  0x35   : > { %3223 = vmatprep.mubr.msk.f32.mxu0 %vm3858_vm3, %v3859_v5 }
  0x38   : > { %3224 = vmatmul.mubr.msk.f32.gmra.mrb[18].mxu0 %vm595_vm4, %v568_v15 }
  0x39   : > { %3226 = vmatprep.mubr.msk.f32.mxu0 %vm3858_vm3, %v3859_v5 }
  0x3c   : > { %3227 = vmatmul.mubr.msk.f32.gmra.mrb[20].mxu0 %vm595_vm4, %v569_v16 }
  0x3d   : > { %3229 = vmatprep.mubr.msk.f32.mxu0 %vm3858_vm3, %v3859_v5 }
  0x40   : > { %3230 = vmatmul.mubr.msk.f32.gmra.mrb[22].mxu0 %vm595_vm4, %v570_v17 }
  0x41   : > { %3232 = vmatprep.mubr.msk.f32.mxu0 %vm3858_vm3, %v3859_v5 }
  0x44   : > { %3233 = vmatmul.mubr.msk.f32.gmra.mrb[24].mxu0 %vm595_vm4, %v571_v18 }
  0x45   : > { %3235 = vmatprep.mubr.msk.f32.mxu0 %vm3858_vm3, %v3859_v5 }
  0x48   : > { %3236 = vmatmul.mubr.msk.f32.gmra.mrb[26].mxu0 %vm595_vm4, %v572_v19 }
  0x49   : > { %3238 = vmatprep.mubr.msk.f32.mxu0 %vm3858_vm3, %v3859_v5 }
  0x4c   : > { %3239 = vmatmul.mubr.msk.f32.gmra.mrb[28].mxu0 %vm595_vm4, %v573_v20 }
  0x4d   : > { %3241 = vmatprep.mubr.msk.f32.mxu0 %vm3858_vm3, %v3859_v5 }
  0x50   : > { %3242 = vmatmul.mubr.msk.f32.gmra.mrb[30].mxu0 %vm595_vm4, %v574_v21 }
  0x51   : > { %3244 = vmatprep.mubr.msk.f32.mxu0 %vm3858_vm3, %v3859_v5 }
  0x54   : > { %3245 = vmatmul.mubr.msk.f32.gmra.mrb[32].mxu0 %vm595_vm4, %v575_v22 }
  0x55   : > { %3247 = vmatprep.mubr.msk.f32.mxu0 %vm3858_vm3, %v3859_v5 }
  0x58   : > { %3248 = vmatmul.mubr.msk.f32.gmra.mrb[34].mxu0 %vm595_vm4, %v576_v23  ;;  %v1140_v23 = vld [vmem:[%s4726_s3] sm:$0xff] }
  0x59   : > { %3250 = vmatprep.mubr.msk.f32.mxu0 %vm3858_vm3, %v3859_v5 }
  0x5c   : > { %3251 = vmatmul.mubr.msk.f32.gmra.mrb[36].mxu0 %vm595_vm4, %v577_v24  ;;  %v1141_v24 = vld [vmem:[%s4726_s3 + $0x8] sm:$0xff] }
  0x5d   : > { %3253 = vmatprep.mubr.msk.f32.mxu0 %vm3858_vm3, %v3859_v5 }
  0x60   : > { %3254 = vmatmul.mubr.msk.f32.gmra.mrb[38].mxu0 %vm595_vm4, %v578_v25 }
  0x61   : > { %3256 = vmatprep.mubr.msk.f32.mxu0 %vm3858_vm3, %v3859_v5 }
  0x64   : > { %3257 = vmatmul.mubr.msk.f32.gmra.mrb[40].mxu0 %vm595_vm4, %v579_v26  ;;  %v3612_v26 = vpack.c.bf16 %v1141_v24, %v1140_v23 }
  0x65   : > { %3259 = vmatprep.mubr.msk.f32.mxu0 %vm3858_vm3, %v3859_v5 }
  0x66   : > { %3613 = vmatprep.subr.bf16.mxu0 %v3612_v26 }
  0x67   : > { %3615 = vmatpush3.bf16.msra.mxu0 %v3612_v26 }
  0x68   : > { %3260 = vmatmul.mubr.msk.f32.gmra.mrb[42].mxu0 %vm595_vm4, %v580_v27  ;;  %v1142_v27 = vld [vmem:[%s4726_s3 + $0x10] sm:$0xff] }
  0x69   : > { %3262 = vmatprep.mubr.msk.f32.mxu0 %vm3858_vm3, %v3859_v5 }
  0x6c   : > { %3263 = vmatmul.mubr.msk.f32.gmra.mrb[44].mxu0 %vm595_vm4, %v581_v28 }
  0x6d   : > { %3265 = vmatprep.mubr.msk.f32.mxu0 %vm3858_vm3, %v3859_v5 }
  0x70   : > { %3266 = vmatmul.mubr.msk.f32.gmra.mrb[46].mxu0 %vm595_vm4, %v582_v29 }
  0x71   : > { %3268 = vmatprep.mubr.msk.f32.mxu0 %vm3858_vm3, %v3859_v5 }
  0x74   : > { %3269 = vmatmul.mubr.msk.f32.gmra.mrb[48].mxu0 %vm595_vm4, %v583_v30 }
  0x75   : > { %3271 = vmatprep.mubr.msk.f32.mxu0 %vm3858_vm3, %v3859_v5 }
  0x78   : > { %3272 = vmatmul.mubr.msk.f32.gmra.mrb[50].mxu0 %vm595_vm4, %v584_v31  ;;  %v1143_v31 = vld [vmem:[%s4726_s3 + $0x18] sm:$0xff] }
  0x79   : > { %3274 = vmatprep.mubr.msk.f32.mxu0 %vm3858_vm3, %v3859_v5 }
  0x7c   : > { %3275 = vmatmul.mubr.msk.f32.gmra.mrb[52].mxu0 %vm595_vm4, %v585_v32  ;;  %v1144_v32 = vld [vmem:[%s4726_s3 + $0x20] sm:$0xff] }
  0x7d   : > { %3277 = vmatprep.mubr.msk.f32.mxu0 %vm3858_vm3, %v3859_v5 }
  0x80   : > { %3278 = vmatmul.mubr.msk.f32.gmra.mrb[54].mxu0 %vm595_vm4, %v586_v33  ;;  %v1145_v33 = vld [vmem:[%s4726_s3 + $0x28] sm:$0xff] }
  0x81   : > { %3280 = vmatprep.mubr.msk.f32.mxu0 %vm3858_vm3, %v3859_v5 }
  0x84   : > { %3281 = vmatmul.mubr.msk.f32.gmra.mrb[56].mxu0 %vm595_vm4, %v587_v34  ;;  %v3616_v34 = vpack.c.bf16 %v1143_v31, %v1142_v27 }
  0x86   : > { %3617 = vmatprep.subr.bf16.mxu0 %v3616_v34 }
  0x87   : > { %3619 = vmatpush3.bf16.msra.mxu0 %v3616_v34 }
  0xe7   : > { %v753_v37 = vpop.f32.mrb[0].mxu0 }
  0xe8   : > { %v754_v38 = vadd.f32 %v4104_v36, %v753_v37  ;;  %v3198_v39 = vpop.f32.mrb[1].mxu0 }
  0xea   : > { %v897_v41 = vmul.f32 0.01, %v754_v38 }
  0xeb   : > { %v758_v40 = vpop.f32.mrb[2].mxu0 }
  0xec   : > { %v759_v42 = vadd.f32 %v4104_v36, %v758_v40  ;;  %v3201_v43 = vpop.f32.mrb[3].mxu0  ;;  %v926_v46 = vmax.f32 %v754_v38, %v897_v41  ;;  %v3620_v38 = vpack.c.bf16 %v1145_v33, %v1144_v32 }
  0xee   : > { %v898_v44 = vmul.f32 0.01, %v759_v42  ;;  %3621 = vmatprep.subr.bf16.mxu0 %v3620_v38 }
  0xef   : > { %v763_v45 = vpop.f32.mrb[4].mxu0  ;;  %3623 = vmatpush3.bf16.msra.mxu0 %v3620_v38 }
  0xf0   : > { %v927_v47 = vmax.f32 %v759_v42, %v898_v44  ;;  %v764_v48 = vadd.f32 %v4104_v36, %v763_v45  ;;  %v3204_v49 = vpop.f32.mrb[5].mxu0 }
  0xf2   : > { %v3571_v50 = vpack.c.bf16 %v927_v47, %v926_v46  ;;  %v899_v52 = vmul.f32 0.01, %v764_v48 }
  0xf3   : > { %v768_v51 = vpop.f32.mrb[6].mxu0 }
  0xf4   : > { %v769_v53 = vadd.f32 %v4104_v36, %v768_v51  ;;  %v3207_v54 = vpop.f32.mrb[7].mxu0  ;;  %3572 = vmatpush1.bf16.msra.mxu1 %v3571_v50  ;;  %v928_v57 = vmax.f32 %v764_v48, %v899_v52 }
  0xf5   : > { %3573 = vmatprep.subr.bf16.mxu1 %v3856_v2 }
  0xf6   : > { %v900_v55 = vmul.f32 0.01, %v769_v53 }
  0xf7   : > { %v773_v56 = vpop.f32.mrb[8].mxu0 }
  0xf8   : > { %v929_v58 = vmax.f32 %v769_v53, %v900_v55  ;;  %v774_v59 = vadd.f32 %v4104_v36, %v773_v56  ;;  %v3210_v60 = vpop.f32.mrb[9].mxu0 }
  0xfa   : > { %v3574_v61 = vpack.c.bf16 %v929_v58, %v928_v57  ;;  %v901_v63 = vmul.f32 0.01, %v774_v59 }
  0xfb   : > { %v778_v62 = vpop.f32.mrb[10].mxu0 }
  0xfc   : > { %v779_v0 = vadd.f32 %v4104_v36, %v778_v62  ;;  %v3213_v1 = vpop.f32.mrb[11].mxu0  ;;  %3575 = vmatpush1.bf16.msra.mxu1 %v3574_v61  ;;  %v930_v7 = vmax.f32 %v774_v59, %v901_v63 }
  0xfd   : > { %3576 = vmatprep.subr.bf16.mxu1 %v3856_v2 }
  0xfe   : > { %v902_v3 = vmul.f32 0.01, %v779_v0 }
  0xff   : > { %v783_v6 = vpop.f32.mrb[12].mxu0 }
 0x100   : > { %v931_v8 = vmax.f32 %v779_v0, %v902_v3  ;;  %v784_v9 = vadd.f32 %v4104_v36, %v783_v6  ;;  %v3216_v10 = vpop.f32.mrb[13].mxu0 }
 0x102   : > { %v3577_v11 = vpack.c.bf16 %v931_v8, %v930_v7  ;;  %v903_v13 = vmul.f32 0.01, %v784_v9 }
 0x103   : > { %v788_v12 = vpop.f32.mrb[14].mxu0 }
 0x104   : > { %v789_v14 = vadd.f32 %v4104_v36, %v788_v12  ;;  %v3219_v15 = vpop.f32.mrb[15].mxu0  ;;  %3578 = vmatpush1.bf16.msra.mxu1 %v3577_v11  ;;  %v932_v18 = vmax.f32 %v784_v9, %v903_v13 }
 0x105   : > { %3579 = vmatprep.subr.bf16.mxu1 %v3856_v2 }
 0x106   : > { %v904_v16 = vmul.f32 0.01, %v789_v14 }
 0x107   : > { %v793_v17 = vpop.f32.mrb[16].mxu0 }
 0x108   : > { %v933_v19 = vmax.f32 %v789_v14, %v904_v16  ;;  %v794_v20 = vadd.f32 %v4104_v36, %v793_v17  ;;  %v3222_v21 = vpop.f32.mrb[17].mxu0 }
 0x10a   : > { %v3580_v22 = vpack.c.bf16 %v933_v19, %v932_v18  ;;  %v905_v28 = vmul.f32 0.01, %v794_v20 }
 0x10b   : > { %v798_v25 = vpop.f32.mrb[18].mxu0 }
 0x10c   : > { %v799_v29 = vadd.f32 %v4104_v36, %v798_v25  ;;  %v3225_v30 = vpop.f32.mrb[19].mxu0  ;;  %3581 = vmatpush1.bf16.msra.mxu1 %v3580_v22  ;;  %v934_v39 = vmax.f32 %v794_v20, %v905_v28 }
 0x10d   : > { %3582 = vmatprep.subr.bf16.mxu1 %v3856_v2 }
 0x10e   : > { %v906_v35 = vmul.f32 0.01, %v799_v29 }
 0x10f   : > { %v803_v37 = vpop.f32.mrb[20].mxu0 }
 0x110   : > { %v935_v40 = vmax.f32 %v799_v29, %v906_v35  ;;  %v804_v41 = vadd.f32 %v4104_v36, %v803_v37  ;;  %v3228_v42 = vpop.f32.mrb[21].mxu0 }
 0x112   : > { %v3583_v43 = vpack.c.bf16 %v935_v40, %v934_v39  ;;  %v907_v45 = vmul.f32 0.01, %v804_v41 }
 0x113   : > { %v808_v44 = vpop.f32.mrb[22].mxu0 }
 0x114   : > { %v809_v46 = vadd.f32 %v4104_v36, %v808_v44  ;;  %v3231_v47 = vpop.f32.mrb[23].mxu0  ;;  %3584 = vmatpush1.bf16.msra.mxu1 %v3583_v43  ;;  %v936_v50 = vmax.f32 %v804_v41, %v907_v45 }
 0x115   : > { %3585 = vmatprep.subr.bf16.mxu1 %v3856_v2 }
 0x116   : > { %v908_v48 = vmul.f32 0.01, %v809_v46 }
 0x117   : > { %v813_v49 = vpop.f32.mrb[24].mxu0 }
 0x118   : > { %v937_v51 = vmax.f32 %v809_v46, %v908_v48  ;;  %v814_v52 = vadd.f32 %v4104_v36, %v813_v49  ;;  %v3234_v53 = vpop.f32.mrb[25].mxu0 }
 0x11a   : > { %v3586_v54 = vpack.c.bf16 %v937_v51, %v936_v50  ;;  %v909_v56 = vmul.f32 0.01, %v814_v52 }
 0x11b   : > { %v818_v55 = vpop.f32.mrb[26].mxu0 }
 0x11c   : > { %v819_v57 = vadd.f32 %v4104_v36, %v818_v55  ;;  %v3237_v58 = vpop.f32.mrb[27].mxu0  ;;  %3587 = vmatpush1.bf16.msra.mxu1 %v3586_v54  ;;  %v938_v61 = vmax.f32 %v814_v52, %v909_v56 }
 0x11d   : > { %3588 = vmatprep.subr.bf16.mxu1 %v3856_v2 }
 0x11e   : > { %v910_v59 = vmul.f32 0.01, %v819_v57 }
 0x11f   : > { %v823_v60 = vpop.f32.mrb[28].mxu0 }
 0x120   : > { %v939_v62 = vmax.f32 %v819_v57, %v910_v59  ;;  %v824_v63 = vadd.f32 %v4104_v36, %v823_v60  ;;  %v3240_v0 = vpop.f32.mrb[29].mxu0 }
 0x122   : > { %v3589_v1 = vpack.c.bf16 %v939_v62, %v938_v61  ;;  %v911_v6 = vmul.f32 0.01, %v824_v63 }
 0x123   : > { %v828_v3 = vpop.f32.mrb[30].mxu0 }
 0x124   : > { %v829_v7 = vadd.f32 %v4104_v36, %v828_v3  ;;  %v3243_v8 = vpop.f32.mrb[31].mxu0  ;;  %3590 = vmatpush1.bf16.msra.mxu1 %v3589_v1  ;;  %v940_v11 = vmax.f32 %v824_v63, %v911_v6 }
 0x125   : > { %3591 = vmatprep.subr.bf16.mxu1 %v3856_v2 }
 0x126   : > { %v912_v9 = vmul.f32 0.01, %v829_v7 }
 0x127   : > { %v833_v10 = vpop.f32.mrb[32].mxu0 }
 0x128   : > { %v941_v12 = vmax.f32 %v829_v7, %v912_v9  ;;  %v834_v13 = vadd.f32 %v4104_v36, %v833_v10  ;;  %v3246_v14 = vpop.f32.mrb[33].mxu0 }
 0x12a   : > { %v3592_v15 = vpack.c.bf16 %v941_v12, %v940_v11  ;;  %v913_v17 = vmul.f32 0.01, %v834_v13 }
 0x12b   : > { %v838_v16 = vpop.f32.mrb[34].mxu0 }
 0x12c   : > { %v839_v18 = vadd.f32 %v4104_v36, %v838_v16  ;;  %v3249_v19 = vpop.f32.mrb[35].mxu0  ;;  %3593 = vmatpush1.bf16.msra.mxu1 %v3592_v15  ;;  %v942_v22 = vmax.f32 %v834_v13, %v913_v17 }
 0x12d   : > { %3594 = vmatprep.subr.bf16.mxu1 %v3856_v2 }
 0x12e   : > { %v914_v20 = vmul.f32 0.01, %v839_v18 }
 0x12f   : > { %v843_v21 = vpop.f32.mrb[36].mxu0 }
 0x130   : > { %v943_v23 = vmax.f32 %v839_v18, %v914_v20  ;;  %v844_v24 = vadd.f32 %v4104_v36, %v843_v21  ;;  %v3252_v25 = vpop.f32.mrb[37].mxu0 }
 0x131   : > { %v2916_v25 = vld [vmem:[%s4726_s3 + $0x50] sm:$0xff] }
 0x132   : > { %v3595_v26 = vpack.c.bf16 %v943_v23, %v942_v22  ;;  %v915_v28 = vmul.f32 0.01, %v844_v24  ;;  %v2914_v23 = vld [vmem:[%s4726_s3 + $0x40] sm:$0xff] }
 0x133   : > { %v848_v27 = vpop.f32.mrb[38].mxu0 }
 0x134   : > { %v849_v29 = vadd.f32 %v4104_v36, %v848_v27  ;;  %v3255_v30 = vpop.f32.mrb[39].mxu0  ;;  %3596 = vmatpush1.bf16.msra.mxu1 %v3595_v26  ;;  %v944_v33 = vmax.f32 %v844_v24, %v915_v28  ;;  %v2915_v24 = vld [vmem:[%s4726_s3 + $0x48] sm:$0xff]  ;;  %v955_v28 = vld [vmem:[%s4728_s5] sm:$0xff] }
 0x135   : > { %3597 = vmatprep.subr.bf16.mxu1 %v3856_v2  ;;  %v3628_v26 = vpack.c.bf16 %v2915_v24, %v2914_v23  ;;  %v2930_v24 = vld [vmem:[%s4726_s3 + $0xb0] sm:$0xff] }
 0x136   : > { %v916_v31 = vmul.f32 0.01, %v849_v29 }
 0x137   : > { %v853_v32 = vpop.f32.mrb[40].mxu0 }
 0x138   : > { %v945_v34 = vmax.f32 %v849_v29, %v916_v31  ;;  %v854_v35 = vadd.f32 %v4104_v36, %v853_v32  ;;  %v3258_v37 = vpop.f32.mrb[41].mxu0  ;;  %v958_v29 = vld [vmem:[%s4728_s5 + $0x18] sm:$0xff]  ;;  %v2918_v31 = vld [vmem:[%s4726_s3 + $0x60] sm:$0xff]  ;;  %v2919_v32 = vld [vmem:[%s4726_s3 + $0x68] sm:$0xff] }
 0x139   : > { %v959_v37 = vld [vmem:[%s4728_s5 + $0x20] sm:$0xff] }
 0x13a   : > { %v3598_v38 = vpack.c.bf16 %v945_v34, %v944_v33  ;;  %v917_v40 = vmul.f32 0.01, %v854_v35  ;;  %v957_v33 = vld [vmem:[%s4728_s5 + $0x10] sm:$0xff]  ;;  %v960_v34 = vld [vmem:[%s4728_s5 + $0x28] sm:$0xff] }
 0x13b   : > { %v858_v39 = vpop.f32.mrb[42].mxu0 }
 0x13c   : > { %v859_v41 = vadd.f32 %v4104_v36, %v858_v39  ;;  %v3261_v42 = vpop.f32.mrb[43].mxu0  ;;  %3599 = vmatpush1.bf16.msra.mxu1 %v3598_v38  ;;  %v946_v45 = vmax.f32 %v854_v35, %v917_v40  ;;  %v3636_v35 = vpack.c.bf16 %v2919_v32, %v2918_v31  ;;  %v962_v38 = vld [vmem:[%s4728_s5 + $0x38] sm:$0xff]  ;;  %v961_v39 = vld [vmem:[%s4728_s5 + $0x30] sm:$0xff]  ;;  %v964_v40 = vld [vmem:[%s4728_s5 + $0x48] sm:$0xff] }
 0x13d   : > { %3600 = vmatprep.subr.bf16.mxu1 %v3856_v2  ;;  %v966_v42 = vld [vmem:[%s4728_s5 + $0x58] sm:$0xff]  ;;  %v2935_v31 = vld [vmem:[%s4726_s3 + $0xc8] sm:$0xff] }
 0x13e   : > { %v918_v43 = vmul.f32 0.01, %v859_v41 }
 0x13f   : > { %v863_v44 = vpop.f32.mrb[44].mxu0 }
 0x140   : > { %v947_v46 = vmax.f32 %v859_v41, %v918_v43  ;;  %v864_v47 = vadd.f32 %v4104_v36, %v863_v44  ;;  %v3264_v48 = vpop.f32.mrb[45].mxu0  ;;  %v963_v41 = vld [vmem:[%s4728_s5 + $0x40] sm:$0xff]  ;;  %v965_v43 = vld [vmem:[%s4728_s5 + $0x50] sm:$0xff]  ;;  %v968_v44 = vld [vmem:[%s4728_s5 + $0x68] sm:$0xff] }
 0x141   : > { %v972_v48 = vld [vmem:[%s4728_s5 + $0x88] sm:$0xff] }
 0x142   : > { %v3601_v49 = vpack.c.bf16 %v947_v46, %v946_v45  ;;  %v919_v51 = vmul.f32 0.01, %v864_v47  ;;  %v967_v45 = vld [vmem:[%s4728_s5 + $0x60] sm:$0xff]  ;;  %v970_v46 = vld [vmem:[%s4728_s5 + $0x78] sm:$0xff] }
 0x143   : > { %v868_v50 = vpop.f32.mrb[46].mxu0 }
 0x144   : > { %v869_v52 = vadd.f32 %v4104_v36, %v868_v50  ;;  %v3267_v53 = vpop.f32.mrb[47].mxu0  ;;  %3602 = vmatpush1.bf16.msra.mxu1 %v3601_v49  ;;  %v948_v56 = vmax.f32 %v864_v47, %v919_v51  ;;  %v969_v47 = vld [vmem:[%s4728_s5 + $0x70] sm:$0xff]  ;;  %v971_v49 = vld [vmem:[%s4728_s5 + $0x80] sm:$0xff]  ;;  %v974_v50 = vld [vmem:[%s4728_s5 + $0x98] sm:$0xff] }
 0x145   : > { %3603 = vmatprep.subr.bf16.mxu1 %v3856_v2  ;;  %v973_v51 = vld [vmem:[%s4728_s5 + $0x90] sm:$0xff]  ;;  %v975_v53 = vld [vmem:[%s4728_s5 + $0xa0] sm:$0x1] }
 0x146   : > { %v920_v54 = vmul.f32 0.01, %v869_v52 }
 0x147   : > { %v873_v55 = vpop.f32.mrb[48].mxu0 }
 0x148   : > { %v949_v57 = vmax.f32 %v869_v52, %v920_v54  ;;  %v874_v58 = vadd.f32 %v4104_v36, %v873_v55  ;;  %v3270_v59 = vpop.f32.mrb[49].mxu0  ;;  %v976_v52 = vld [vmem:[%s4728_s5 + $0xa8] sm:$0x1]  ;;  %v1146_v54 = vld [vmem:[%s4726_s3 + $0x30] sm:$0xff]  ;;  %v1147_v55 = vld [vmem:[%s4726_s3 + $0x38] sm:$0xff] }
 0x14a   : > { %v3604_v60 = vpack.c.bf16 %v949_v57, %v948_v56  ;;  %v921_v62 = vmul.f32 0.01, %v874_v58  ;;  %v3624_v56 = vpack.c.bf16 %v1147_v55, %v1146_v54  ;;  %v2920_v57 = vld [vmem:[%s4726_s3 + $0x70] sm:$0xff] }
 0x14b   : > { %v878_v61 = vpop.f32.mrb[50].mxu0  ;;  %v2940_v55 = vld [vmem:[%s4726_s3 + $0xf0] sm:$0xff] }
 0x14c   : > { %v879_v63 = vadd.f32 %v4104_v36, %v878_v61  ;;  %v3273_v0 = vpop.f32.mrb[51].mxu0  ;;  %3605 = vmatpush1.bf16.msra.mxu1 %v3604_v60  ;;  %v950_v6 = vmax.f32 %v874_v58, %v921_v62  ;;  %3625 = vmatprep.subr.bf16.mxu0 %v3624_v56  ;;  %v2921_v58 = vld [vmem:[%s4726_s3 + $0x78] sm:$0xff]  ;;  %v2924_v60 = vld [vmem:[%s4726_s3 + $0x80] sm:$0xff]  ;;  %v2925_v61 = vld [vmem:[%s4726_s3 + $0x88] sm:$0xff] }
 0x14d   : > { %3606 = vmatprep.subr.bf16.mxu1 %v3856_v2  ;;  %3627 = vmatpush3.bf16.msra.mxu0 %v3624_v56  ;;  %v3640_v59 = vpack.c.bf16 %v2921_v58, %v2920_v57  ;;  %v3644_v62 = vpack.c.bf16 %v2925_v61, %v2924_v60  ;;  %v2941_v56 = vld [vmem:[%s4726_s3 + $0xf8] sm:$0xff] }
 0x14e   : > { %v922_v1 = vmul.f32 0.01, %v879_v63  ;;  %3756 = vmatprep.subr.bf16.mxu0 %v3856_v2  ;;  %v3672_v60 = vpack.c.bf16 %v2941_v56, %v2940_v55  ;;  %v2986_v56 = vld [vmem:[%s4726_s3 + $0x210] sm:$0xff] }
 0x14f   : > { %v883_v3 = vpop.f32.mrb[52].mxu0 }
 0x150   : > { %v951_v7 = vmax.f32 %v879_v63, %v922_v1  ;;  %v884_v8 = vadd.f32 %v4104_v36, %v883_v3  ;;  %v3276_v9 = vpop.f32.mrb[53].mxu0 }
 0x152   : > { %v3607_v10 = vpack.c.bf16 %v951_v7, %v950_v6  ;;  %v923_v12 = vmul.f32 0.01, %v884_v8  ;;  %v2926_v7 = vld [vmem:[%s4726_s3 + $0x90] sm:$0xff] }
 0x153   : > { %v888_v11 = vpop.f32.mrb[54].mxu0 }
 0x154   : > { %v889_v13 = vadd.f32 %v4104_v36, %v888_v11  ;;  %v3279_v14 = vpop.f32.mrb[55].mxu0  ;;  %3608 = vmatpush1.bf16.msra.mxu1 %v3607_v10  ;;  %v952_v17 = vmax.f32 %v884_v8, %v923_v12  ;;  %v2927_v8 = vld [vmem:[%s4726_s3 + $0x98] sm:$0xff] }
 0x155   : > { %3609 = vmatprep.subr.bf16.mxu1 %v3856_v2 }
 0x156   : > { %v924_v15 = vmul.f32 0.01, %v889_v13 }
 0x157   : > { %v893_v16 = vpop.f32.mrb[56].mxu0 }
 0x158   : > { %v953_v18 = vmax.f32 %v889_v13, %v924_v15  ;;  %v894_v19 = vadd.f32 %v4104_v36, %v893_v16  ;;  %v3282_v20 = vpop.f32.mrb[57].mxu0  ;;  %v2917_v36 = vld [vmem:[%s4726_s3 + $0x58] sm:$0xff]  ;;  %v3648_v13 = vpack.c.bf16 %v2927_v8, %v2926_v7  ;;  %v2928_v15 = vld [vmem:[%s4726_s3 + $0xa0] sm:$0xff]  ;;  %v2929_v16 = vld [vmem:[%s4726_s3 + $0xa8] sm:$0xff] }
 0x159   : > { %v3632_v30 = vpack.c.bf16 %v2917_v36, %v2916_v25  ;;  %v2931_v25 = vld [vmem:[%s4726_s3 + $0xb8] sm:$0xff] }
 0x15a   : > { %v925_v21 = vmul.f32 0.01, %v894_v19  ;;  %v3610_v22 = vpack.c.bf16 %v953_v18, %v952_v17  ;;  %v2947_v7 = vld [vmem:[%s4726_s3 + $0x118] sm:$0xff] }
 0x15c   : > { %3611 = vmatpush1.bf16.msra.mxu1 %v3610_v22  ;;  %v954_v27 = vmax.f32 %v894_v19, %v925_v21  ;;  %v3652_v22 = vpack.c.bf16 %v2929_v16, %v2928_v15  ;;  %v2951_v15 = vld [vmem:[%s4726_s3 + $0x138] sm:$0xff] }
 0x15d   : > { %1070 = vmatprep.subr.mxu1 %v3859_v5 }
 0x160   : > { %2899 = vmatpush1.msk.msra.mxu1 %vm683_vm0, %v954_v27 }
 0x161   : > { %1079 = vmatmul.mubr.f32.vlgmr.msra.gmra.mrb[0].mxu1 %v955_v28  ;;  %3629 = vmatprep.subr.bf16.mxu1 %v3628_v26  ;;  %v3656_v28 = vpack.c.bf16 %v2931_v25, %v2930_v24  ;;  %v2959_v24 = vld [vmem:[%s4726_s3 + $0x168] sm:$0xff] }
 0x162   : > { %2901 = vmatprep.mubr.msk.f32.mxu1 %vm977_vm5, %v958_v29  ;;  %3631 = vmatpush3.bf16.msra.mxu1 %v3628_v26 }
 0x163   : > { %3633 = vmatprep.subr.bf16.mxu1 %v3632_v30 }
 0x165   : > { %1084 = vmatmul.mubr.f32.gmra.mrb[2].mxu1 %v957_v33 }
 0x166   : > { %2902 = vmatprep.mubr.msk.f32.mxu1 %vm977_vm5, %v960_v34  ;;  %3635 = vmatpush3.bf16.msra.mxu1 %v3632_v30  ;;  %v2934_v30 = vld [vmem:[%s4726_s3 + $0xc0] sm:$0xff] }
 0x167   : > { %3637 = vmatprep.subr.bf16.mxu1 %v3636_v35 }
 0x169   : > { %1089 = vmatmul.mubr.f32.gmra.mrb[4].mxu1 %v959_v37 }
 0x16a   : > { %2903 = vmatprep.mubr.msk.f32.mxu1 %vm977_vm5, %v962_v38  ;;  %3639 = vmatpush3.bf16.msra.mxu1 %v3636_v35  ;;  %v3660_v35 = vpack.c.bf16 %v2935_v31, %v2934_v30  ;;  %v2966_v31 = vld [vmem:[%s4726_s3 + $0x190] sm:$0xff] }
 0x16b   : > { %3641 = vmatprep.subr.bf16.mxu1 %v3640_v59 }
 0x16d   : > { %1094 = vmatmul.mubr.f32.gmra.mrb[6].mxu1 %v961_v39  ;;  %v2936_v39 = vld [vmem:[%s4726_s3 + $0xd0] sm:$0xff] }
 0x16e   : > { %2904 = vmatprep.mubr.msk.f32.mxu1 %vm977_vm5, %v964_v40  ;;  %3643 = vmatpush3.bf16.msra.mxu1 %v3640_v59  ;;  %v2937_v40 = vld [vmem:[%s4726_s3 + $0xd8] sm:$0xff] }
 0x16f   : > { %3645 = vmatprep.subr.bf16.mxu1 %v3644_v62 }
 0x171   : > { %1099 = vmatmul.mubr.f32.gmra.mrb[8].mxu1 %v963_v41 }
 0x172   : > { %2905 = vmatprep.mubr.msk.f32.mxu1 %vm977_vm5, %v966_v42 }
 0x175   : > { %1104 = vmatmul.mubr.f32.gmra.mrb[10].mxu1 %v965_v43 }
 0x176   : > { %2906 = vmatprep.mubr.msk.f32.mxu1 %vm977_vm5, %v968_v44  ;;  %v3664_v44 = vpack.c.bf16 %v2937_v40, %v2936_v39  ;;  %v2971_v39 = vld [vmem:[%s4726_s3 + $0x1b8] sm:$0xff] }
 0x179   : > { %1109 = vmatmul.mubr.f32.gmra.mrb[12].mxu1 %v967_v45 }
 0x17a   : > { %2907 = vmatprep.mubr.msk.f32.mxu1 %vm977_vm5, %v970_v46 }
 0x17d   : > { %1114 = vmatmul.mubr.f32.gmra.mrb[14].mxu1 %v969_v47  ;;  %v2938_v47 = vld [vmem:[%s4726_s3 + $0xe0] sm:$0xff] }
 0x17e   : > { %2908 = vmatprep.mubr.msk.f32.mxu1 %vm977_vm5, %v972_v48  ;;  %v2939_v48 = vld [vmem:[%s4726_s3 + $0xe8] sm:$0xff] }
 0x181   : > { %1119 = vmatmul.mubr.f32.gmra.mrb[16].mxu1 %v971_v49 }
 0x182   : > { %2909 = vmatprep.mubr.msk.f32.mxu1 %vm977_vm5, %v974_v50 }
 0x185   : > { %1124 = vmatmul.mubr.f32.gmra.mrb[18].mxu1 %v973_v51 }
 0x186   : > { %2910 = vmatprep.mubr.msk.f32.mxu1 %vm977_vm5, %v976_v52  ;;  %v3668_v52 = vpack.c.bf16 %v2939_v48, %v2938_v47  ;;  %v2978_v47 = vld [vmem:[%s4726_s3 + $0x1e0] sm:$0xff]  ;;  %v2979_v48 = vld [vmem:[%s4726_s3 + $0x1e8] sm:$0xff] }
 0x189   : > { %1129 = vmatmul.mubr.f32.gmra.mrb[20].mxu1 %v975_v53 }
 0x234   : > { %v1080_v63 = vpop.f32.mrb[0].mxu1 }
 0x235   : > { %v1082_v0 = vpop.f32.mrb[1].mxu1  ;;  %3299 = vmatprep.mubr.msk.f32.mxu0 %vm1148_vm6, %v1080_v63  ;;  %v2945_v63 = vld [vmem:[%s4726_s3 + $0x108] sm:$0xff] }
 0x238   : > { %v1085_v1 = vpop.f32.mrb[2].mxu1 }
 0x239   : > { %v1087_v3 = vpop.f32.mrb[3].mxu1  ;;  %3300 = vmatmul.mubr.msk.f32.vlgmr.msra.gmra.mrb[58].mxu0 %vm1148_vm6, %v1085_v1  ;;  %v1243_v9 = vrot.slane %v1085_v1, 1 }
 0x23a   : > { %3458 = vmatprep.mubr.msk.f32.mxu0 %vm3858_vm3, %v3859_v5 }
 0x23c   : > { %v1090_v6 = vpop.f32.mrb[4].mxu1 }
 0x23d   : > { %v1244_v10 = vrot.slane %v1090_v6, 1  ;;  %v1092_v11 = vpop.f32.mrb[5].mxu1  ;;  %v1338_v17 = vrot.slane %v1090_v6, 2  ;;  %v2946_v6 = vld [vmem:[%s4726_s3 + $0x110] sm:$0xff] }
 0x23e   : > { %v2948_v11 = vld [vmem:[%s4726_s3 + $0x120] sm:$0xff] }
 0x23f   : > { %v1245_v12 = vsel %vm1242_vm7, %v1243_v9, %v1244_v10 }
 0x240   : > { %v1095_v14 = vpop.f32.mrb[6].mxu1  ;;  %3318 = vmatprep.mubr.msk.f32.mxu1 %vm1148_vm6, %v1245_v12  ;;  %v2949_v12 = vld [vmem:[%s4726_s3 + $0x128] sm:$0xff] }
 0x241   : > { %v1339_v18 = vrot.slane %v1095_v14, 2  ;;  %3319 = vmatmul.mubr.msk.f32.vlgmr.msra.gmra.mrb[22].mxu1 %vm1148_vm6, %v1244_v10  ;;  %v1097_v19 = vpop.f32.mrb[7].mxu1  ;;  %v1433_v20 = vrot.slane %v1095_v14, 3  ;;  %v3680_v10 = vpack.c.bf16 %v2947_v7, %v2946_v6  ;;  %v2950_v14 = vld [vmem:[%s4726_s3 + $0x130] sm:$0xff] }
 0x242   : > { %3647 = vmatpush3.bf16.msra.mxu1 %v3644_v62  ;;  %v2944_v62 = vld [vmem:[%s4726_s3 + $0x100] sm:$0xff]  ;;  %v3688_v16 = vpack.c.bf16 %v2951_v15, %v2950_v14 }
 0x243   : > { %3649 = vmatprep.subr.bf16.mxu1 %v3648_v13  ;;  %v1340_v21 = vsel %vm1337_vm8, %v1338_v17, %v1339_v18  ;;  %v3676_v3 = vpack.c.bf16 %v2945_v63, %v2944_v62  ;;  %v2954_v17 = vld [vmem:[%s4726_s3 + $0x140] sm:$0xff]  ;;  %v2989_v62 = vld [vmem:[%s4726_s3 + $0x228] sm:$0xff] }
 0x244   : > { %3337 = vmatprep.mubr.msk.f32.mxu1 %vm1148_vm6, %v1340_v21  ;;  %v4297_v23 = vpop.f32.mrb[8].mxu1  ;;  %v2957_v21 = vld [vmem:[%s4726_s3 + $0x158] sm:$0xff] }
 0x245   : > { %v1434_v36 = vrot.slane %v4297_v23, 3  ;;  %v1102_v26 = vpop.f32.mrb[9].mxu1  ;;  %v1528_v27 = vrot.slane %v4297_v23, 4  ;;  %v2958_v23 = vld [vmem:[%s4726_s3 + $0x160] sm:$0xff] }
 0x246   : > { %3651 = vmatpush3.bf16.msra.mxu1 %v3648_v13  ;;  %v3684_v13 = vpack.c.bf16 %v2949_v12, %v2948_v11  ;;  %v3700_v25 = vpack.c.bf16 %v2959_v24, %v2958_v23  ;;  %v2961_v26 = vld [vmem:[%s4726_s3 + $0x178] sm:$0xff]  ;;  %v2073_v24 = vld [vmem:[%s4730_s7 + $0x20] sm:$0xff] }
 0x247   : > { %3653 = vmatprep.subr.bf16.mxu1 %v3652_v22  ;;  %v1435_v29 = vsel %vm1432_vm9, %v1433_v20, %v1434_v36  ;;  %v2956_v20 = vld [vmem:[%s4726_s3 + $0x150] sm:$0xff]  ;;  %v2072_v23 = vld [vmem:[%s4730_s7 + $0x18] sm:$0xff] }
 0x248   : > { %v4315_v32 = vpop.f32.mrb[10].mxu1 }
 0x249   : > { %v1529_v33 = vrot.slane %v4315_v32, 4  ;;  %v1107_v34 = vpop.f32.mrb[11].mxu1  ;;  %v1623_v37 = vrot.slane %v4315_v32, 5  ;;  %v2967_v32 = vld [vmem:[%s4726_s3 + $0x198] sm:$0xff] }
 0x24a   : > { %3655 = vmatpush3.bf16.msra.mxu1 %v3652_v22  ;;  %v3696_v22 = vpack.c.bf16 %v2957_v21, %v2956_v20  ;;  %v2968_v34 = vld [vmem:[%s4726_s3 + $0x1a0] sm:$0xff] }
 0x24b   : > { %3657 = vmatprep.subr.bf16.mxu1 %v3656_v28  ;;  %v1530_v38 = vsel %vm1527_vm10, %v1528_v27, %v1529_v33  ;;  %v1992_v20 = vld [vmem:[%s4729_s6] sm:$0x1] }
 0x24c   : > { %v4328_v41 = vpop.f32.mrb[12].mxu1 }
 0x24d   : > { %v1624_v42 = vrot.slane %v4328_v41, 5  ;;  %v1112_v43 = vpop.f32.mrb[13].mxu1  ;;  %v1718_v45 = vrot.slane %v4328_v41, 6  ;;  %v2974_v41 = vld [vmem:[%s4726_s3 + $0x1c0] sm:$0xff] }
 0x24e   : > { %3659 = vmatpush3.bf16.msra.mxu1 %v3656_v28  ;;  %v2964_v28 = vld [vmem:[%s4726_s3 + $0x180] sm:$0xff] }
 0x24f   : > { %3661 = vmatprep.subr.bf16.mxu1 %v3660_v35  ;;  %v4334_v46 = vsel %vm1622_vm11, %v1623_v37, %v1624_v42 }
 0x250   : > { %v4342_v49 = vpop.f32.mrb[14].mxu1 }
 0x251   : > { %3338 = vmatmul.mubr.msk.f32.vlgmr.msra.gmra.mrb[22].mxu1 %vm1148_vm6, %v1339_v18  ;;  %v1719_v50 = vrot.slane %v4342_v49, 6  ;;  %v1117_v51 = vpop.f32.mrb[15].mxu1  ;;  %v1812_v53 = vrot.slane %v4342_v49, 7  ;;  %v2955_v18 = vld [vmem:[%s4726_s3 + $0x148] sm:$0xff]  ;;  %v2984_v49 = vld [vmem:[%s4726_s3 + $0x200] sm:$0xff] }
 0x252   : > { %3663 = vmatpush3.bf16.msra.mxu1 %v3660_v35  ;;  %3356 = vmatprep.mubr.msk.f32.mxu1 %vm1148_vm6, %v1435_v29  ;;  %v3692_v19 = vpack.c.bf16 %v2955_v18, %v2954_v17  ;;  %v2965_v29 = vld [vmem:[%s4726_s3 + $0x188] sm:$0xff]  ;;  %v3732_v51 = vpack.c.bf16 %v2979_v48, %v2978_v47 }
 0x253   : > { %3665 = vmatprep.subr.bf16.mxu1 %v3664_v44  ;;  %v4350_v54 = vsel %vm1717_vm12, %v1718_v45, %v1719_v50  ;;  %v3708_v30 = vpack.c.bf16 %v2965_v29, %v2964_v28  ;;  %v2969_v35 = vld [vmem:[%s4726_s3 + $0x1a8] sm:$0xff]  ;;  %v2977_v45 = vld [vmem:[%s4726_s3 + $0x1d8] sm:$0xff]  ;;  %v2153_v29 = vld [vmem:[%s4732_s9] sm:$0xff] }
 0x254   : > { %v4358_v57 = vpop.f32.mrb[16].mxu1  ;;  %v3716_v37 = vpack.c.bf16 %v2969_v35, %v2968_v34  ;;  %v2070_v18 = vld [vmem:[%s4730_s7 + $0x8] sm:$0xff] }
 0x255   : > { %v1813_v58 = vrot.slane %v4358_v57, 7  ;;  %v1122_v59 = vpop.f32.mrb[17].mxu1 }
 0x256   : > { %3667 = vmatpush3.bf16.msra.mxu1 %v3664_v44  ;;  %v2976_v44 = vld [vmem:[%s4726_s3 + $0x1d0] sm:$0xff]  ;;  %v2987_v59 = vld [vmem:[%s4726_s3 + $0x218] sm:$0xff] }
 0x257   : > { %3669 = vmatprep.subr.bf16.mxu1 %v3668_v52  ;;  %v4364_v61 = vsel %vm683_vm0, %v1812_v53, %v1813_v58  ;;  %v2981_v53 = vld [vmem:[%s4726_s3 + $0x1f8] sm:$0xff] }
 0x258   : > { %v4372_v0 = vpop.f32.mrb[18].mxu1 }
 0x259   : > { %v1127_v1 = vpop.f32.mrb[19].mxu1 }
 0x25a   : > { %3671 = vmatpush3.bf16.msra.mxu1 %v3668_v52  ;;  %v2980_v52 = vld [vmem:[%s4726_s3 + $0x1f0] sm:$0xff] }
 0x25b   : > { %3673 = vmatprep.subr.bf16.mxu1 %v3672_v60  ;;  %v2990_v1 = vld [vmem:[%s4726_s3 + $0x230] sm:$0xff] }
 0x25c   : > { %v4380_v8 = vpop.f32.mrb[20].mxu1 }
 0x25d   : > { %v1132_v9 = vpop.f32.mrb[21].mxu1 }
 0x25e   : > { %3675 = vmatpush3.bf16.msra.mxu1 %v3672_v60  ;;  %v3744_v60 = vpack.c.bf16 %v2987_v59, %v2986_v56  ;;  %v2322_v56 = vld [vmem:[%s4734_s11 + $0x18] sm:$0xff] }
 0x25f   : > { %3677 = vmatprep.subr.bf16.mxu1 %v3676_v3 }
 0x261   : > { %3357 = vmatmul.mubr.msk.f32.vlgmr.msra.gmra.mrb[22].mxu1 %vm1148_vm6, %v1434_v36  ;;  %v2960_v36 = vld [vmem:[%s4726_s3 + $0x170] sm:$0xff] }
 0x262   : > { %3679 = vmatpush3.bf16.msra.mxu1 %v3676_v3  ;;  %3375 = vmatprep.mubr.msk.f32.mxu1 %vm1148_vm6, %v1530_v38  ;;  %v3704_v27 = vpack.c.bf16 %v2961_v26, %v2960_v36  ;;  %v2970_v38 = vld [vmem:[%s4726_s3 + $0x1b0] sm:$0xff]  ;;  %v2991_v3 = vld [vmem:[%s4726_s3 + $0x238] sm:$0xff] }
 0x263   : > { %3681 = vmatprep.subr.bf16.mxu1 %v3680_v10  ;;  %v3720_v40 = vpack.c.bf16 %v2971_v39, %v2970_v38  ;;  %v3752_v6 = vpack.c.bf16 %v2991_v3, %v2990_v1  ;;  %v2075_v26 = vld [vmem:[%s4730_s7 + $0x30] sm:$0xff]  ;;  %v2157_v38 = vld [vmem:[%s4732_s9 + $0x20] sm:$0xff]  ;;  %v2158_v39 = vld [vmem:[%s4732_s9 + $0x28] sm:$0xff] }
 0x266   : > { %3683 = vmatpush3.bf16.msra.mxu1 %v3680_v10 }
 0x267   : > { %3685 = vmatprep.subr.bf16.mxu1 %v3684_v13 }
 0x26a   : > { %3687 = vmatpush3.bf16.msra.mxu1 %v3684_v13 }
 0x26b   : > { %3689 = vmatprep.subr.bf16.mxu1 %v3688_v16 }
 0x26e   : > { %3691 = vmatpush3.bf16.msra.mxu1 %v3688_v16 }
 0x26f   : > { %3693 = vmatprep.subr.bf16.mxu1 %v3692_v19 }
 0x271   : > { %3376 = vmatmul.mubr.msk.f32.vlgmr.msra.gmra.mrb[22].mxu1 %vm1148_vm6, %v1529_v33  ;;  %v3712_v33 = vpack.c.bf16 %v2967_v32, %v2966_v31  ;;  %v2155_v32 = vld [vmem:[%s4732_s9 + $0x10] sm:$0xff] }
 0x272   : > { %3695 = vmatpush3.bf16.msra.mxu1 %v3692_v19  ;;  %3394 = vmatprep.mubr.msk.f32.mxu1 %vm1148_vm6, %v4334_v46  ;;  %v3728_v46 = vpack.c.bf16 %v2977_v45, %v2976_v44  ;;  %v2077_v44 = vld [vmem:[%s4731_s8] sm:$0x1] }
 0x273   : > { %3697 = vmatprep.subr.bf16.mxu1 %v3696_v22 }
 0x276   : > { %3699 = vmatpush3.bf16.msra.mxu1 %v3696_v22  ;;  %v2071_v22 = vld [vmem:[%s4730_s7 + $0x10] sm:$0xff] }
 0x277   : > { %3701 = vmatprep.subr.bf16.mxu1 %v3700_v25  ;;  %v3764_v4 = vpack.c.bf16 %v2072_v23, %v2071_v22  ;;  %v2405_v23 = vld [vmem:[%s4735_s12 + $0x3] sm:$0x1] }
 0x27a   : > { %3703 = vmatpush3.bf16.msra.mxu1 %v3700_v25  ;;  %v2074_v25 = vld [vmem:[%s4730_s7 + $0x28] sm:$0xff] }
 0x27b   : > { %3705 = vmatprep.subr.bf16.mxu1 %v3704_v27  ;;  %v3767_v36 = vpack.c.bf16 %v2074_v25, %v2073_v24 }
 0x27e   : > { %3707 = vmatpush3.bf16.msra.mxu1 %v3704_v27  ;;  %v2076_v27 = vld [vmem:[%s4730_s7 + $0x38] sm:$0xff] }
 0x27f   : > { %3709 = vmatprep.subr.bf16.mxu1 %v3708_v30  ;;  %v3770_v28 = vpack.c.bf16 %v2076_v27, %v2075_v26  ;;  %v3007_v26 = vld [vmem:[%s4734_s11 + $0x48] sm:$0xff]  ;;  %v2161_v27 = vld [vmem:[%s4735_s12] sm:$0x1] }
 0x281   : > { %3395 = vmatmul.mubr.msk.f32.vlgmr.msra.gmra.mrb[22].mxu1 %vm1148_vm6, %v1624_v42  ;;  %v2975_v42 = vld [vmem:[%s4726_s3 + $0x1c8] sm:$0xff] }
 0x282   : > { %3711 = vmatpush3.bf16.msra.mxu1 %v3708_v30  ;;  %3413 = vmatprep.mubr.msk.f32.mxu1 %vm1148_vm6, %v4350_v54  ;;  %v3724_v43 = vpack.c.bf16 %v2975_v42, %v2974_v41  ;;  %v3736_v54 = vpack.c.bf16 %v2981_v53, %v2980_v52  ;;  %v2154_v30 = vld [vmem:[%s4732_s9 + $0x8] sm:$0xff]  ;;  %v2159_v41 = vld [vmem:[%s4732_s9 + $0x30] sm:$0xff]  ;;  %v2160_v42 = vld [vmem:[%s4732_s9 + $0x38] sm:$0xff] }
 0x283   : > { %3713 = vmatprep.subr.bf16.mxu1 %v3712_v33  ;;  %v3773_v31 = vpack.c.bf16 %v2154_v30, %v2153_v29  ;;  %v2238_v52 = vld [vmem:[%s4733_s10] sm:$0xf] }
 0x284   : > { %v2237_v53 = vld [vmem:[%s555_s1] sm:$0x1] }
 0x286   : > { %3715 = vmatpush3.bf16.msra.mxu1 %v3712_v33  ;;  %v2156_v33 = vld [vmem:[%s4732_s9 + $0x18] sm:$0xff] }
 0x287   : > { %3717 = vmatprep.subr.bf16.mxu1 %v3716_v37 }
 0x28a   : > { %3719 = vmatpush3.bf16.msra.mxu1 %v3716_v37  ;;  %v3776_v37 = vpack.c.bf16 %v2156_v33, %v2155_v32  ;;  %v3008_v32 = vld [vmem:[%s4734_s11 + $0x50] sm:$0xff]  ;;  %v3009_v33 = vld [vmem:[%s4734_s11 + $0x58] sm:$0xff] }
 0x28b   : > { %3721 = vmatprep.subr.bf16.mxu1 %v3720_v40 }
 0x28e   : > { %3723 = vmatpush3.bf16.msra.mxu1 %v3720_v40  ;;  %v3779_v40 = vpack.c.bf16 %v2158_v39, %v2157_v38  ;;  %v2641_v38 = vld [vmem:[%s4736_s13] sm:$0xff]  ;;  %v2642_v39 = vld [vmem:[%s4736_s13 + $0x8] sm:$0xff] }
 0x28f   : > { %3725 = vmatprep.subr.bf16.mxu1 %v3724_v43 }
 0x291   : > { %3414 = vmatmul.mubr.msk.f32.vlgmr.msra.gmra.mrb[22].mxu1 %vm1148_vm6, %v1719_v50  ;;  %v2985_v50 = vld [vmem:[%s4726_s3 + $0x208] sm:$0xff] }
 0x292   : > { %3727 = vmatpush3.bf16.msra.mxu1 %v3724_v43  ;;  %3432 = vmatprep.mubr.msk.f32.mxu1 %vm1148_vm6, %v4364_v61  ;;  %v3740_v55 = vpack.c.bf16 %v2985_v50, %v2984_v49  ;;  %v2988_v61 = vld [vmem:[%s4726_s3 + $0x220] sm:$0xff]  ;;  %v3782_v43 = vpack.c.bf16 %v2160_v42, %v2159_v41  ;;  %v2320_v49 = vld [vmem:[%s4734_s11 + $0x8] sm:$0xff]  ;;  %v2643_v41 = vld [vmem:[%s4736_s13 + $0x10] sm:$0xff] }
 0x293   : > { %3729 = vmatprep.subr.bf16.mxu1 %v3728_v46  ;;  %v3748_v63 = vpack.c.bf16 %v2989_v62, %v2988_v61  ;;  %v2239_v62 = vld [vmem:[%s4735_s12 + $0x1] sm:$0x1]  ;;  %v2644_v42 = vld [vmem:[%s4736_s13 + $0x18] sm:$0xff] }
 0x296   : > { %3731 = vmatpush3.bf16.msra.mxu1 %v3728_v46 }
 0x297   : > { %3733 = vmatprep.subr.bf16.mxu1 %v3732_v51 }
 0x29a   : > { %3735 = vmatpush3.bf16.msra.mxu1 %v3732_v51 }
 0x29b   : > { %3737 = vmatprep.subr.bf16.mxu1 %v3736_v54 }
 0x29e   : > { %3739 = vmatpush3.bf16.msra.mxu1 %v3736_v54  ;;  %v2319_v54 = vld [vmem:[%s4734_s11] sm:$0xff] }
 0x29f   : > { %3741 = vmatprep.subr.bf16.mxu1 %v3740_v55  ;;  %v3785_v50 = vpack.c.bf16 %v2320_v49, %v2319_v54  ;;  %v2722_v49 = vld [vmem:[%s4738_s15 + $0x8] sm:$0xff] }
 0x2a1   : > { %3433 = vmatmul.mubr.msk.f32.vlgmr.msra.gmra.mrb[22].mxu1 %vm1148_vm6, %v1813_v58 }
 0x2a2   : > { %3743 = vmatpush3.bf16.msra.mxu1 %v3740_v55  ;;  %3451 = vmatprep.mubr.msk.f32.mxu1 %vm1148_vm6, %v4372_v0  ;;  %v2911_v0 = vld [vmem:[%s4727_s4 + $0x1] ss:$0 sm:$0xff]  ;;  %v2321_v55 = vld [vmem:[%s4734_s11 + $0x10] sm:$0xff] }
 0x2a3   : > { %3745 = vmatprep.subr.bf16.mxu1 %v3744_v60  ;;  %v3788_v59 = vpack.c.bf16 %v2322_v56, %v2321_v55  ;;  %v2645_v55 = vld [vmem:[%s4737_s14] sm:$0x1] }
 0x2a6   : > { %3747 = vmatpush3.bf16.msra.mxu1 %v3744_v60 }
 0x2a7   : > { %3749 = vmatprep.subr.bf16.mxu1 %v3748_v63 }
 0x2aa   : > { %3751 = vmatpush3.bf16.msra.mxu1 %v3748_v63 }
 0x2ab   : > { %3753 = vmatprep.subr.bf16.mxu1 %v3752_v6 }
 0x2ae   : > { %3755 = vmatpush3.bf16.msra.mxu1 %v3752_v6 }
 0x2b1   : > { %3452 = vmatmul.mubr.msk.f32.vlgmr.msra.gmra.mrb[22].mxu1 %vm1148_vm6, %v4380_v8  ;;  %v2069_v8 = vld [vmem:[%s4730_s7] sm:$0xff] }
 0x2b2   : > { %v3761_v21 = vpack.c.bf16 %v2070_v18, %v2069_v8 }
 0x30c   : > { %v3301_v57 = vpop.f32.mrb[58].mxu0 }
 0x30d   : > { %v1221_v58 = vpop.f32.mrb[59].mxu0  ;;  %v1231_v7 = vadd.f32 %v3301_v57, %v2911_v0 }
 0x30e   : > { %v1230_v9 = vadd.f32 %v2911_v0, %v1221_v58  ;;  %v3001_v58 = vld [vmem:[%s4734_s11 + $0x20] sm:$0xff]  ;;  %v3002_v0 = vld [vmem:[%s4734_s11 + $0x28] sm:$0xff] }
 0x384   : > { %v3453_v10 = vpop.f32.mrb[22].mxu1 }
 0x385   : > { %v3818_v11 = vadd.f32 %v3453_v10, %v1231_v7  ;;  %v1977_v12 = vpop.f32.mrb[23].mxu1  ;;  %v3791_v7 = vpack.c.bf16 %v3002_v0, %v3001_v58  ;;  %v3004_v10 = vld [vmem:[%s4734_s11 + $0x38] sm:$0xff] }
 0x386   : > { %v3820_v13 = vadd.f32 %v1977_v12, %v1230_v9  ;;  %v3003_v9 = vld [vmem:[%s4734_s11 + $0x30] sm:$0xff]  ;;  %v2323_v12 = vld [vmem:[%s4735_s12 + $0x2] sm:$0x1] }
 0x387   : > { %v1989_v14 = vmul.f32 0.01, %v3818_v11 }
 0x388   : > { %v1988_v15 = vmul.f32 0.01, %v3820_v13 }
 0x389   : > { %v1991_v16 = vmax.f32 %v3818_v11, %v1989_v14  ;;  %v3794_v11 = vpack.c.bf16 %v3004_v10, %v3003_v9 }
 0x38a   : > { %v1990_v17 = vmax.f32 %v3820_v13, %v1988_v15 }
 0x38c   : > { %v3757_v19 = vpack.c.bf16 %v1991_v16, %v1990_v17  ;;  %v3010_v16 = vld [vmem:[%s4734_s11 + $0x60] sm:$0xff]  ;;  %v3011_v17 = vld [vmem:[%s4734_s11 + $0x68] sm:$0xff] }
 0x38d   : > { %v3797_v18 = vpack.c.bf16 %v3011_v17, %v3010_v16 }
 0x38e   : > { %3759 = vmatpush3.bf16.msk.msra.mxu0 %vm3966_vm2, %v3757_v19 }
 0x38f   : > { %3760 = vmatprep.subr.bf16.mxu0 %v3856_v2 }
 0x391   : > { %3459 = vmatmul.mubr.msk.f32.vlgmr.msra.gmra.mrb[60].mxu0 %vm595_vm4, %v1992_v20  ;;  %v3012_v20 = vld [vmem:[%s4734_s11 + $0x70] sm:$0xff] }
 0x392   : > { %3762 = vmatpush3.bf16.msra.mxu0 %v3761_v21  ;;  %3477 = vmatprep.mubr.msk.f32.mxu0 %vm3858_vm3, %v3859_v5  ;;  %v3013_v21 = vld [vmem:[%s4734_s11 + $0x78] sm:$0xff] }
 0x393   : > { %3763 = vmatprep.subr.bf16.mxu0 %v3856_v2  ;;  %v3800_v22 = vpack.c.bf16 %v3013_v21, %v3012_v20 }
 0x396   : > { %3765 = vmatpush3.bf16.msra.mxu0 %v3764_v4 }
 0x397   : > { %3766 = vmatprep.subr.bf16.mxu0 %v3856_v2 }
 0x39a   : > { %3768 = vmatpush3.bf16.msra.mxu0 %v3767_v36  ;;  %v3006_v36 = vld [vmem:[%s4734_s11 + $0x40] sm:$0xff] }
 0x39b   : > { %3769 = vmatprep.subr.bf16.mxu0 %v3856_v2  ;;  %v3803_v29 = vpack.c.bf16 %v3007_v26, %v3006_v36 }
 0x39e   : > { %3771 = vmatpush3.bf16.msra.mxu0 %v3770_v28 }
 0x39f   : > { %3772 = vmatprep.subr.bf16.mxu0 %v3856_v2 }
 0x464   : > { %v2065_v34 = vpop.f32.mrb[60].mxu0 }
 0x465   : > { %v3460_v35 = vpop.f32.mrb[61].mxu0  ;;  %3478 = vmatmul.mubr.msk.f32.vlgmr.msra.gmra.mrb[62].mxu0 %vm1148_vm6, %v2065_v34  ;;  %v3806_v34 = vpack.c.bf16 %v3009_v33, %v3008_v32 }
 0x466   : > { %3774 = vmatpush3.bf16.msra.mxu0 %v3773_v31  ;;  %3496 = vmatprep.mubr.msk.f32.mxu0 %vm3858_vm3, %v3859_v5 }
 0x467   : > { %3775 = vmatprep.subr.bf16.mxu0 %v3856_v2 }
 0x46a   : > { %3777 = vmatpush3.bf16.msra.mxu0 %v3776_v37 }
 0x46b   : > { %3778 = vmatprep.subr.bf16.mxu0 %v3856_v2 }
 0x46e   : > { %3780 = vmatpush3.bf16.msra.mxu0 %v3779_v40  ;;  %v3809_v40 = vpack.c.bf16 %v2642_v39, %v2641_v38 }
 0x46f   : > { %3781 = vmatprep.subr.bf16.mxu0 %v3856_v2 }
 0x472   : > { %3783 = vmatpush3.bf16.msra.mxu0 %v3782_v43  ;;  %v3812_v43 = vpack.c.bf16 %v2644_v42, %v2643_v41 }
 0x473   : > { %3499 = vmatprep.subr.mxu0 %v3859_v5 }
 0x538   : > { %v2147_v45 = vpop.f32.mrb[62].mxu0 }
 0x539   : > { %v2148_v46 = vadd.f32 %v2147_v45, %v2077_v44  ;;  %v3479_v47 = vpop.f32.mrb[63].mxu0 }
 0x53a   : > { %v2637_v47 = vld [vmem:[%s4735_s12 + $0x4] sm:$0x1] }
 0x53b   : > { %v2151_v48 = vmul.f32 0.01, %v2148_v46 }
 0x53d   : > { %v2152_v51 = vmax.f32 %v2148_v46, %v2151_v48 }
 0x53f   : > { %3497 = vmatmul.mubr.msk.f32.vlgmr.msra.gmra.mrb[64].mxu0 %vm1148_vm6, %v2152_v51 }
 0x540   : > { %3500 = vmatpush3.msk.msra.mxu0 %vm1527_vm10, %v2238_v52  ;;  %3501 = vmatprep.mubr.msk.f32.mxu0 %vm3858_vm3, %v3859_v5 }
 0x541   : > { %3784 = vmatprep.subr.bf16.mxu0 %v3856_v2 }
 0x543   : > { %3502 = vmatmul.mubr.msk.f32.vlgmr.msra.gmra.mrb[66].mxu0 %vm2240_vm13, %v2237_v53 }
 0x544   : > { %3512 = vmatprep.mubr.msk.f32.mxu0 %vm3858_vm3, %v3859_v5  ;;  %3786 = vmatpush3.bf16.msra.mxu0 %v3785_v50 }
 0x545   : > { %3787 = vmatprep.subr.bf16.mxu0 %v3856_v2 }
 0x548   : > { %3789 = vmatpush3.bf16.msra.mxu0 %v3788_v59 }
 0x549   : > { %3790 = vmatprep.subr.bf16.mxu0 %v3856_v2 }
 0x612   : > { %v2231_v60 = vpop.f32.mrb[64].mxu0 }
 0x613   : > { %v3498_v61 = vpop.f32.mrb[65].mxu0  ;;  %v2232_v30 = vadd.f32 %v2231_v60, %v2161_v27 }
 0x615   : > { %v2235_v35 = vmul.f32 0.01, %v2232_v30 }
 0x616   : > { %v2313_v63 = vpop.f32.mrb[66].mxu0 }
 0x617   : > { %v2314_v1 = vadd.f32 %v2313_v63, %v2239_v62  ;;  %v3503_v3 = vpop.f32.mrb[67].mxu0  ;;  %v2236_v37 = vmax.f32 %v2232_v30, %v2235_v35  ;;  %v2798_v62 = vlaneseq  ;;  %v2723_v63 = vld [vmem:[%s4739_s16] sm:$0x1] }
 0x619   : > { %v2317_v6 = vmul.f32 0.01, %v2314_v1  ;;  %v2799_v3 = vand.u32 127, %v2798_v62 }
 0x61b   : > { %v2318_v57 = vmax.f32 %v2314_v1, %v2317_v6  ;;  %vm2800_vm0 = vcmp.eq.s32.totalorder %v2799_v3, 1 }
 0x61d   : > { %3513 = vmatmul.mubr.msk.f32.vlgmr.msra.gmra.mrb[68].mxu0 %vm2324_vm14, %v2318_v57 }
 0x61e   : > { %3523 = vmatprep.mubr.msk.f32.mxu0 %vm3858_vm3, %v3859_v5  ;;  %3792 = vmatpush3.bf16.msra.mxu0 %v3791_v7 }
 0x61f   : > { %3793 = vmatprep.subr.bf16.mxu0 %v3856_v2 }
 0x622   : > { %3795 = vmatpush3.bf16.msra.mxu0 %v3794_v11 }
 0x623   : > { %3796 = vmatprep.subr.bf16.mxu0 %v3856_v2 }
 0x6f0   : > { %v2394_v13 = vpop.f32.mrb[68].mxu0 }
 0x6f1   : > { %v2395_v14 = vadd.f32 %v2394_v13, %v2323_v12  ;;  %v3514_v15 = vpop.f32.mrb[69].mxu0 }
 0x6f3   : > { %v2398_v8 = vmul.f32 0.01, %v2395_v14 }
 0x6f5   : > { %v2399_v19 = vmax.f32 %v2395_v14, %v2398_v8 }
 0x6f7   : > { %3524 = vmatmul.mubr.msk.f32.vlgmr.msra.gmra.mrb[70].mxu0 %vm2324_vm14, %v2399_v19 }
 0x6f8   : > { %3798 = vmatpush3.bf16.msra.mxu0 %v3797_v18  ;;  %3534 = vmatprep.mubr.msk.f32.mxu0 %vm3858_vm3, %v3859_v5 }
 0x6f9   : > { %3799 = vmatprep.subr.bf16.mxu0 %v3856_v2 }
 0x6fc   : > { %3801 = vmatpush3.bf16.msra.mxu0 %v3800_v22 }
 0x6fd   : > { %3802 = vmatprep.subr.bf16.mxu0 %v3856_v2 }
 0x7ca   : > { %v2475_v4 = vpop.f32.mrb[70].mxu0 }
 0x7cb   : > { %v2476_v24 = vadd.f32 %v2475_v4, %v2405_v23  ;;  %v3525_v25 = vpop.f32.mrb[71].mxu0 }
 0x7cd   : > { %v2479_v28 = vmul.f32 0.01, %v2476_v24 }
 0x7cf   : > { %v2480_v31 = vmax.f32 %v2476_v24, %v2479_v28 }
 0x7d1   : > { %3535 = vmatmul.mubr.msk.f32.vlgmr.msra.gmra.mrb[72].mxu0 %vm2324_vm14, %v2480_v31 }
 0x7d2   : > { %3804 = vmatpush3.bf16.msra.mxu0 %v3803_v29  ;;  %3545 = vmatprep.mubr.msk.f32.mxu0 %vm3858_vm3, %v3859_v5 }
 0x7d3   : > { %3805 = vmatprep.subr.bf16.mxu0 %v3856_v2 }
 0x7d6   : > { %3807 = vmatpush3.bf16.msra.mxu0 %v3806_v34 }
 0x7d7   : > { %3808 = vmatprep.subr.bf16.mxu0 %v3856_v2 }
 0x7d9   : > { %3546 = vmatmul.mubr.msk.f32.vlgmr.msra.gmra.mrb[74].mxu0 %vm2324_vm14, %v2236_v37 }
 0x7da   : > { %3556 = vmatprep.mubr.msk.f32.mxu0 %vm3858_vm3, %v3859_v5  ;;  %3810 = vmatpush3.bf16.msra.mxu0 %v3809_v40 }
 0x7db   : > { %3811 = vmatprep.subr.bf16.mxu0 %v3856_v2 }
 0x7de   : > { %3813 = vmatpush3.bf16.msra.mxu0 %v3812_v43 }
 0x7df   : > { %3814 = vmatprep.subr.bf16.mxu0 %v3856_v2  ;;  %v2721_v2 = vld [vmem:[%s4738_s15] sm:$0xff] }
 0x7e0   : > { %v3815_v50 = vpack.c.bf16 %v2722_v49, %v2721_v2 }
 0x8a4   : > { %v2560_v44 = vpop.f32.mrb[72].mxu0 }
 0x8a5   : > { %v3536_v45 = vpop.f32.mrb[73].mxu0 }
 0x8ac   : > { %v2633_v46 = vpop.f32.mrb[74].mxu0 }
 0x8ad   : > { %v2634_v48 = vadd.f32 %v2633_v46, %v2560_v44  ;;  %v3547_v51 = vpop.f32.mrb[75].mxu0 }
 0x8af   : > { %v2638_v52 = vadd.f32 %v2637_v47, %v2634_v48 }
 0x8b1   : > { %v2639_v53 = vmul.f32 0.01, %v2638_v52 }
 0x8b3   : > { %v2640_v54 = vmax.f32 %v2638_v52, %v2639_v53 }
 0x8b5   : > { %3557 = vmatmul.mubr.msk.f32.vlgmr.msra.gmra.mrb[76].mxu0 %vm2324_vm14, %v2640_v54 }
 0x8b6   : > { %3563 = vmatprep.mubr.msk.f32.mxu0 %vm3858_vm3, %v3859_v5  ;;  %3816 = vmatpush3.bf16.msra.mxu0 %v3815_v50 }
 0x988   : > { %v2715_v56 = vpop.f32.mrb[76].mxu0 }
 0x989   : > { %v2716_v59 = vadd.f32 %v2715_v56, %v2645_v55  ;;  %v3558_v60 = vpop.f32.mrb[77].mxu0 }
 0x98b   : > { %v2719_v61 = vmul.f32 0.01, %v2716_v59 }
 0x98d   : > { %v2720_v5 = vmax.f32 %v2716_v59, %v2719_v61 }
 0x98f   : > { %3564 = vmatmul.mubr.msk.f32.vlgmr.msra.gmra.mrb[78].mxu0 %vm2724_vm15, %v2720_v5 }
 0xa62   : > { %v2794_v1 = vpop.f32.mrb[78].mxu0 }
 0xa63   : > { %v2795_v6 = vadd.f32 %v2794_v1, %v2723_v63  ;;  %v3565_v57 = vpop.f32.mrb[79].mxu0 }
 0xa65   : > { %v2801_v58 = vmax.f32 %v2795_v6, -20.0 }
 0xa67   : > { %v2802_v0 = vmin.f32 %v2801_v58, 2.0 }
 0xa69   : > { %v2803_v7 = vsel %vm2800_vm0, %v2802_v0, %v2795_v6 }
 0xa6a   : > { %2805 = vst.msk [vmem:[%s558_s0] sm:$0x1] %vm2804_vm1, %v2803_v7 }
 0xa6b PF: > { %s27_s24 = sadd.s32 1, %s3854_s24  }
 0xa6c   : > { %p24_p4 = scmp.ge.s32.totalorder %s27_s24, 4  }
 0xa6e   :  { %26 = sbr.rel (!%p24_p4) target bundleno = 3 (0x3), region = 132 }

</bundles_post_ra>
